<compile_context>
chip_gen: v6e
topology: v6e:2x2x1
jax: 0.10.0
libtpu: 0.0.40
codegen_flags: <defaults>
</compile_context>

<pallas_src>
import math

import jax
import jax.numpy as jnp
from jax.experimental import pallas as pl
from jax.experimental.pallas import tpu as pltpu

# ---------------------------------------------------------------------------
# configuration (small, consistent with the module's __init__ signature)
# ---------------------------------------------------------------------------
D_MODEL = 32
N_HEADS = 2
N_LAYERS = 2
FFN_HIDDEN = D_MODEL * 4          # 128
AE_HIDDEN = D_MODEL // 2          # 16
NUM_ACT = 4
NUM_EMO = 7
BATCH = 2
SEQ = 8
TOKENS = BATCH * SEQ              # 16
STACK = N_HEADS * TOKENS          # 32  (head, batch, seq) stacked rows
VOCAB = 30522
MAX_LEN = 128
SPARSITY_RHO = 0.05
SPARSITY_BETA = 3.0
LN_EPS = 1e-12
BN_EPS = 1e-5
HEAD_DIM = D_MODEL // N_HEADS     # 16
ATTN_SCALE = 1.0 / math.sqrt(HEAD_DIM)

LANES = 128                       # lane width of every slab / activation
OUT_ROWS = 8                      # packed output tile rows

QKV_BLOCK = 3 * HEAD_DIM          # 48 lanes:  [Q|K|V] for one head
QKV_H_STRIDE = 64                 # head h's qkv block starts at lane h*64

# -------- bf16 weight-slab layout (rows, 128 lanes); all offsets 16-aligned
W_QKV_OFF, W_QKV_ROWS = 0, LANES          # fused per-head Q/K/V   (true 32x96)
W_O_OFF,   W_O_ROWS   = 128, D_MODEL      # output projection      (true 32x32)
W_F1_OFF,  W_F1_ROWS  = 160, LANES        # FFN up                 (true 32x128)
W_F2_OFF,  W_F2_ROWS  = 288, LANES        # FFN down               (true 128x32)
W_LAYER_ROWS = 416
W_ENC_OFF = N_LAYERS * W_LAYER_ROWS       # 832  AE encoder        (true 32x16)
W_CLF_OFF = W_ENC_OFF + LANES             # 960  fused dec+clf     (true 16x128)
W_ROWS = W_CLF_OFF + LANES                # 1088

# -------- f32 bias/LN/BN slab layout: 8 rows per layer + 8 head rows
B_LAYER_ROWS = 8
(B_QKV, B_O, B_G1, B_BE1, B_F1, B_F2, B_G2, B_BE2) = range(8)
B_HEAD_OFF = N_LAYERS * B_LAYER_ROWS      # 16
(B_BN_G, B_BN_B, B_ENC, B_CLF) = range(4)
B_ROWS = B_HEAD_OFF + 8                   # 24


# ---------------------------------------------------------------------------
# in-kernel building blocks
# ---------------------------------------------------------------------------
def _layer_norm_padded(v, gamma, beta):
    """LayerNorm over the D_MODEL true lanes of a zero-padded (rows,128) tensor.

    Uses E[x^2] - mu^2 so the 96 zero lanes do not perturb the statistics;
    gamma/beta are zero in the padded lanes, so padding stays exactly zero.
    """
    s1 = jnp.sum(v, axis=-1, keepdims=True)
    s2 = jnp.sum(v * v, axis=-1, keepdims=True)
    mu = s1 * (1.0 / D_MODEL)
    var = jnp.maximum(s2 * (1.0 / D_MODEL) - mu * mu, 0.0)
    return gamma * ((v - mu) * jax.lax.rsqrt(var + LN_EPS)) + beta


# ---------------------------------------------------------------------------
# the single fused kernel
# ---------------------------------------------------------------------------
def fused_forward_kernel(x_ref, bias_ref, w_ref, b_ref, out_ref):
    x = x_ref[...]                      # (16, 128) f32, lanes >= D_MODEL are 0
    attn_bias = bias_ref[...]           # (32, 32)  f32 additive {0, -10000}

    for l in range(N_LAYERS):           # unrolled (N_LAYERS = 2)
        wb = l * W_LAYER_ROWS
        bg = b_ref[l * B_LAYER_ROWS:(l + 1) * B_LAYER_ROWS, :]       # (8,128)

        w_qkv = w_ref[wb + W_QKV_OFF: wb + W_QKV_OFF + W_QKV_ROWS, :]
        w_o0  = w_ref[wb + W_O_OFF:   wb + W_O_OFF + HEAD_DIM, :]
        w_o1  = w_ref[wb + W_O_OFF + HEAD_DIM: wb + W_O_OFF + 2 * HEAD_DIM, :]
        w_f1  = w_ref[wb + W_F1_OFF:  wb + W_F1_OFF + W_F1_ROWS, :]
        w_f2  = w_ref[wb + W_F2_OFF:  wb + W_F2_OFF + W_F2_ROWS, :]

        # ---- fused Q/K/V projection for both heads: ONE matmul -------------
        # output lanes: head0 [Q|K|V] at 0:48, head1 [Q|K|V] at 64:112
        # (attention scale already folded into the Q columns host-side)
        qkv = jnp.dot(x.astype(jnp.bfloat16), w_qkv,
                      preferred_element_type=jnp.float32) + bg[B_QKV:B_QKV + 1]
        qkv_b = qkv.astype(jnp.bfloat16)

        # stack heads along sublanes: rows 0:16 = head0, 16:32 = head1
        qkv_stk = jnp.concatenate(
            [qkv_b[:, 0:QKV_BLOCK],
             qkv_b[:, QKV_H_STRIDE:QKV_H_STRIDE + QKV_BLOCK]], axis=0)  # (32,48)
        q = qkv_stk[:, 0:HEAD_DIM]
        k = qkv_stk[:, HEAD_DIM:2 * HEAD_DIM]
        v = qkv_stk[:, 2 * HEAD_DIM:3 * HEAD_DIM]

        # ---- single block-diagonal softmax over (head, batch) blocks -------
        s = jax.lax.dot_general(q, k, (((1,), (1,)), ((), ())),
                                preferred_element_type=jnp.float32) + attn_bias
        m = jnp.max(s, axis=-1, keepdims=True)
        e = jnp.exp(s - m)
        p = e * pl.reciprocal(jnp.sum(e, axis=-1, keepdims=True), approx=True)
        ctx = jnp.dot(p.astype(jnp.bfloat16), v,
                      preferred_element_type=jnp.float32)               # (32,16)
        ctx_b = ctx.astype(jnp.bfloat16)

        # ---- output projection (== concat-heads @ W_o, without the concat) -
        attn = (jnp.dot(ctx_b[0:TOKENS], w_o0, preferred_element_type=jnp.float32)
                + jnp.dot(ctx_b[TOKENS:STACK], w_o1,
                          preferred_element_type=jnp.float32)
                + bg[B_O:B_O + 1])                                       # (16,128)

        x1 = _layer_norm_padded(x + attn, bg[B_G1:B_G1 + 1], bg[B_BE1:B_BE1 + 1])

        # ---- position-wise FFN (dropout = identity) -------------------------
        h1 = jnp.maximum(
            jnp.dot(x1.astype(jnp.bfloat16), w_f1,
                    preferred_element_type=jnp.float32) + bg[B_F1:B_F1 + 1], 0.0)
        f = jnp.dot(h1.astype(jnp.bfloat16), w_f2,
                    preferred_element_type=jnp.float32) + bg[B_F2:B_F2 + 1]
        x = _layer_norm_padded(x1 + f, bg[B_G2:B_G2 + 1], bg[B_BE2:B_BE2 + 1])

    # ------------------- BatchNorm1d + sparse AE + classifiers ---------------
    hg = b_ref[B_HEAD_OFF:B_HEAD_OFF + 8, :]
    w_enc = w_ref[W_ENC_OFF:W_ENC_OFF + LANES, :]
    w_clf = w_ref[W_CLF_OFF:W_CLF_OFF + LANES, :]

    # BatchNorm1d over the flattened (B*S, D) rows, current-batch statistics
    mu = jnp.mean(x, axis=0, keepdims=True)
    var = jnp.mean((x - mu) ** 2, axis=0, keepdims=True)
    xn = (hg[B_BN_G:B_BN_G + 1] * ((x - mu) * jax.lax.rsqrt(var + BN_EPS))
          + hg[B_BN_B:B_BN_B + 1])                                       # (16,128)

    # sparse-autoencoder sigmoid encoder (true lanes 0:AE_HIDDEN)
    enc = jax.nn.sigmoid(
        jnp.dot(xn.astype(jnp.bfloat16), w_enc,
                preferred_element_type=jnp.float32) + hg[B_ENC:B_ENC + 1])

    # KL sparsity penalty: rho_hat = mean over the batch dim, summed over (S, H_ae)
    rho_hat = (enc[0:SEQ] + enc[SEQ:TOKENS]) * (1.0 / BATCH)             # (8,128)
    lane = jax.lax.broadcasted_iota(jnp.int32, (SEQ, LANES), 1)
    kl_terms = (SPARSITY_RHO * jnp.log(SPARSITY_RHO / rho_hat)
                + (1.0 - SPARSITY_RHO)
                * jnp.log((1.0 - SPARSITY_RHO) / (1.0 - rho_hat)))
    kl_terms = jnp.where(lane < AE_HIDDEN, kl_terms, 0.0)                # mask pad lanes
    kl = SPARSITY_BETA * jnp.sum(kl_terms, axis=(0, 1), keepdims=True)   # (1,1)

    # fused AE-decoder + packed classifiers (lanes 0:4 = act, 4:11 = emotion)
    logits = jnp.dot(enc.astype(jnp.bfloat16), w_clf,
                     preferred_element_type=jnp.float32) + hg[B_CLF:B_CLF + 1]

    # lane-dense packed output: row 0 = batch-0 CLS logits, row 1 = batch-1 CLS
    # logits, rows 2..7 = KL splat
    out_ref[...] = jnp.concatenate(
        [logits[0:1], logits[SEQ:SEQ + 1],
         jnp.broadcast_to(kl, (OUT_ROWS - BATCH, LANES))], axis=0)


# ---------------------------------------------------------------------------
# pallas_call wrapper (whole arrays resident in VMEM, no grid — model is tiny)
# ---------------------------------------------------------------------------
_VMEM = pl.BlockSpec(memory_space=pltpu.MemorySpace.VMEM)


def run_fused_forward(x_pad, attn_bias, w_slab, b_slab):
    return pl.pallas_call(
        fused_forward_kernel,
        out_shape=jax.ShapeDtypeStruct((OUT_ROWS, LANES), jnp.float32),
        in_specs=[_VMEM] * 4,
        out_specs=_VMEM,
    )(x_pad, attn_bias, w_slab, b_slab)


# ---------------------------------------------------------------------------
# parameters (deterministic synthetic init, torch-like shapes)
# ---------------------------------------------------------------------------
def sinusoidal_pos_encoding(max_len, d_model):
    pos = jnp.arange(max_len, dtype=jnp.float32)[:, None]
    i2 = jnp.arange(0, d_model, 2, dtype=jnp.float32)[None, :]
    angle = pos / jnp.power(10000.0, i2 / d_model)
    pe = jnp.zeros((max_len, d_model), jnp.float32)
    pe = pe.at[:, 0::2].set(jnp.sin(angle))
    pe = pe.at[:, 1::2].set(jnp.cos(angle))
    return pe


def init_params(key):
    keys = iter(jax.random.split(key, 128))

    def nrm(shape, scale=0.02):
        return (scale * jax.random.normal(next(keys), shape)).astype(jnp.float32)

    ones = lambda shape: jnp.ones(shape, jnp.float32)
    zeros = lambda shape: jnp.zeros(shape, jnp.float32)

    emb = nrm((VOCAB, D_MODEL)).at[1].set(0.0)      # padding_idx=1 -> zero row
    pos = sinusoidal_pos_encoding(MAX_LEN, D_MODEL)

    layer_params = []
    for _ in range(N_LAYERS):
        layer_params.append((
            nrm((D_MODEL, D_MODEL)), nrm((1, D_MODEL)),        # wq, bq
            nrm((D_MODEL, D_MODEL)), nrm((1, D_MODEL)),        # wk, bk
            nrm((D_MODEL, D_MODEL)), nrm((1, D_MODEL)),        # wv, bv
            nrm((D_MODEL, D_MODEL)), nrm((1, D_MODEL)),        # wo, bo
            ones((1, D_MODEL)), zeros((1, D_MODEL)),           # LN1 gamma, beta
            nrm((D_MODEL, FFN_HIDDEN)), nrm((1, FFN_HIDDEN)),  # ffn w1, b1
            nrm((FFN_HIDDEN, D_MODEL)), nrm((1, D_MODEL)),     # ffn w2, b2
            ones((1, D_MODEL)), zeros((1, D_MODEL)),           # LN2 gamma, beta
        ))

    head_params = (
        ones((1, D_MODEL)), zeros((1, D_MODEL)),               # BN gamma, beta
        nrm((D_MODEL, AE_HIDDEN)), nrm((1, AE_HIDDEN)),        # AE encoder
        nrm((AE_HIDDEN, D_MODEL)), nrm((1, D_MODEL)),          # AE decoder
        nrm((D_MODEL, NUM_ACT)), nrm((1, NUM_ACT)),            # act classifier
        nrm((D_MODEL, NUM_EMO)), nrm((1, NUM_EMO)),            # emotion classifier
    )
    return emb, pos, layer_params, head_params


# ---------------------------------------------------------------------------
# host-side packing: everything into one bf16 weight slab + one f32 bias slab
# ---------------------------------------------------------------------------
def prepare_slabs(layer_params, head_params):
    w_blocks, b_blocks = [], []

    for (wq, bq, wk, bk, wv, bv, wo, bo,
         g1, be1, wf1, bf1, wf2, bf2, g2, be2) in layer_params:
        wq_s, bq_s = wq * ATTN_SCALE, bq * ATTN_SCALE      # fold attn scale into Q

        # fused head-major Q/K/V block (rows 0:32 true)
        blk = jnp.zeros((W_QKV_ROWS, LANES), jnp.float32)
        brow = jnp.zeros((LANES,), jnp.float32)
        for h in range(N_HEADS):
            sl = slice(h * HEAD_DIM, (h + 1) * HEAD_DIM)
            w_h = jnp.concatenate([wq_s[:, sl], wk[:, sl], wv[:, sl]], axis=1)
            b_h = jnp.concatenate([bq_s[0, sl], bk[0, sl], bv[0, sl]], axis=0)
            c0 = h * QKV_H_STRIDE
            blk = blk.at[:D_MODEL, c0:c0 + QKV_BLOCK].set(w_h)
            brow = brow.at[c0:c0 + QKV_BLOCK].set(b_h)
        w_blocks.append(blk)

        # W_o (rows = concat-head ctx dim), FFN weights
        w_blocks.append(jnp.zeros((W_O_ROWS, LANES), jnp.float32)
                        .at[:, :D_MODEL].set(wo))
        w_blocks.append(jnp.zeros((W_F1_ROWS, LANES), jnp.float32)
                        .at[:D_MODEL, :FFN_HIDDEN].set(wf1))
        w_blocks.append(jnp.zeros((W_F2_ROWS, LANES), jnp.float32)
                        .at[:FFN_HIDDEN, :D_MODEL].set(wf2))

        lb = jnp.zeros((B_LAYER_ROWS, LANES), jnp.float32)
        lb = lb.at[B_QKV, :].set(brow)
        lb = lb.at[B_O,   :D_MODEL].set(bo[0])
        lb = lb.at[B_G1,  :D_MODEL].set(g1[0])
        lb = lb.at[B_BE1, :D_MODEL].set(be1[0])
        lb = lb.at[B_F1,  :FFN_HIDDEN].set(bf1[0])
        lb = lb.at[B_F2,  :D_MODEL].set(bf2[0])
        lb = lb.at[B_G2,  :D_MODEL].set(g2[0])
        lb = lb.at[B_BE2, :D_MODEL].set(be2[0])
        b_blocks.append(lb)

    (bn_g, bn_b, enc_w, enc_b, dec_w, dec_b,
     act_w, act_b, emo_w, emo_b) = head_params

    # AE encoder block
    w_blocks.append(jnp.zeros((LANES, LANES), jnp.float32)
                    .at[:D_MODEL, :AE_HIDDEN].set(enc_w))

    # fused AE-decoder + packed classifiers:
    # logits = enc_cls @ (dec_w @ clf_w) + (dec_b @ clf_w + clf_b)
    clf_w = jnp.zeros((D_MODEL, LANES), jnp.float32)
    clf_w = clf_w.at[:, :NUM_ACT].set(act_w)
    clf_w = clf_w.at[:, NUM_ACT:NUM_ACT + NUM_EMO].set(emo_w)
    clf_b = jnp.zeros((LANES,), jnp.float32)
    clf_b = clf_b.at[:NUM_ACT].set(act_b[0])
    clf_b = clf_b.at[NUM_ACT:NUM_ACT + NUM_EMO].set(emo_b[0])
    clf_eff = dec_w @ clf_w                      # (AE_HIDDEN, 128)
    b_clf_eff = dec_b[0] @ clf_w + clf_b         # (128,)
    w_blocks.append(jnp.zeros((LANES, LANES), jnp.float32)
                    .at[:AE_HIDDEN, :].set(clf_eff))

    hb = jnp.zeros((8, LANES), jnp.float32)
    hb = hb.at[B_BN_G, :D_MODEL].set(bn_g[0])
    hb = hb.at[B_BN_B, :D_MODEL].set(bn_b[0])
    hb = hb.at[B_ENC,  :AE_HIDDEN].set(enc_b[0])
    hb = hb.at[B_CLF,  :].set(b_clf_eff)
    b_blocks.append(hb)

    w_slab = jnp.concatenate(w_blocks, axis=0).astype(jnp.bfloat16)
    b_slab = jnp.concatenate(b_blocks, axis=0)
    assert w_slab.shape == (W_ROWS, LANES)
    assert b_slab.shape == (B_ROWS, LANES)
    return w_slab, b_slab


# ---------------------------------------------------------------------------
# end-to-end forward: embedding gather + mask prep in XLA, rest in the kernel.
# The whole thing is jitted into one executable.
# ---------------------------------------------------------------------------
def dialog_transformer_forward(input_ids, attention_mask, emb, pos, w_slab, b_slab):
    b, s = input_ids.shape
    x = emb[input_ids] + pos[:s][None, :, :]                   # (B, S, D)
    x2 = x.reshape(b * s, D_MODEL).astype(jnp.float32)
    x_pad = jnp.pad(x2, ((0, 0), (0, LANES - D_MODEL)))        # (B*S, 128)

    # additive attention bias on the (head, batch)-stacked layout:
    # 0 inside a (head, batch) block for non-pad keys, -10000 elsewhere.
    grp = jnp.arange(N_HEADS * b * s, dtype=jnp.int32) // s    # row -> (head,batch)
    same_block = grp[:, None] == grp[None, :]
    key_keep = jnp.tile(attention_mask.reshape(-1) != 0, (N_HEADS,))
    attn_bias = jnp.where(same_block & key_keep[None, :],
                          0.0, -10000.0).astype(jnp.float32)   # (32, 32)

    out = run_fused_forward(x_pad, attn_bias, w_slab, b_slab)
    act = out[:b, :NUM_ACT]
    emo = out[:b, NUM_ACT:NUM_ACT + NUM_EMO]
    kl = out[b, 0]
    return act, emo, kl


# ---------------------------------------------------------------------------
if __name__ == "__main__":
    key = jax.random.PRNGKey(0)
    k_param, k_ids = jax.random.split(key)

    emb, pos, layer_params, head_params = init_params(k_param)
    w_slab, b_slab = prepare_slabs(layer_params, head_params)

    input_ids = jax.random.randint(k_ids, (BATCH, SEQ), 0, VOCAB, dtype=jnp.int32)
    attention_mask = jnp.array(
        [[1, 1, 1, 1, 1, 1, 1, 1],
         [1, 1, 1, 1, 1, 0, 0, 0]], dtype=jnp.int32)

    fwd = jax.jit(dialog_transformer_forward)
    act_out, emo_out, kl_div = fwd(input_ids, attention_mask,
                                   emb, pos, w_slab, b_slab)
    jax.block_until_ready((act_out, emo_out, kl_div))

    assert act_out.shape == (BATCH, NUM_ACT)
    assert emo_out.shape == (BATCH, NUM_EMO)
    assert kl_div.shape == ()
    assert bool(jnp.all(jnp.isfinite(act_out)))
    assert bool(jnp.all(jnp.isfinite(emo_out)))
    assert bool(jnp.isfinite(kl_div))
    print("KERNEL_OK")
</pallas_src>

<mosaic_0001>
module attributes {stable_mosaic.version = 11 : i64} {
  func.func @fused_forward_kernel(%arg0: memref<16x128xf32, #tpu.memory_space<vmem>>, %arg1: memref<32x32xf32, #tpu.memory_space<vmem>>, %arg2: memref<1088x128xbf16, #tpu.memory_space<vmem>>, %arg3: memref<24x128xf32, #tpu.memory_space<vmem>>, %arg4: memref<8x128xf32, #tpu.memory_space<vmem>>) attributes {dimension_semantics = [], scalar_prefetch = 0 : i64, scratch_operands = 0 : i64, tpu.core_type = #tpu.core_type<tc>} {
    %c0 = arith.constant 0 : index
    %c0_0 = arith.constant 0 : index
    %0 = vector.load %arg0[%c0, %c0_0] : memref<16x128xf32, #tpu.memory_space<vmem>>, vector<16x128xf32>
    %c0_1 = arith.constant 0 : index
    %c0_2 = arith.constant 0 : index
    %1 = vector.load %arg1[%c0_1, %c0_2] : memref<32x32xf32, #tpu.memory_space<vmem>>, vector<32x32xf32>
    %c0_3 = arith.constant 0 : index
    %c0_4 = arith.constant 0 : index
    %2 = vector.load %arg3[%c0_3, %c0_4] : memref<24x128xf32, #tpu.memory_space<vmem>>, vector<8x128xf32>
    %c0_5 = arith.constant 0 : index
    %c0_6 = arith.constant 0 : index
    %3 = vector.load %arg2[%c0_5, %c0_6] : memref<1088x128xbf16, #tpu.memory_space<vmem>>, vector<128x128xbf16>
    %c128 = arith.constant 128 : index
    %c0_7 = arith.constant 0 : index
    %4 = vector.load %arg2[%c128, %c0_7] : memref<1088x128xbf16, #tpu.memory_space<vmem>>, vector<16x128xbf16>
    %c144 = arith.constant 144 : index
    %c0_8 = arith.constant 0 : index
    %5 = vector.load %arg2[%c144, %c0_8] : memref<1088x128xbf16, #tpu.memory_space<vmem>>, vector<16x128xbf16>
    %c160 = arith.constant 160 : index
    %c0_9 = arith.constant 0 : index
    %6 = vector.load %arg2[%c160, %c0_9] : memref<1088x128xbf16, #tpu.memory_space<vmem>>, vector<128x128xbf16>
    %c288 = arith.constant 288 : index
    %c0_10 = arith.constant 0 : index
    %7 = vector.load %arg2[%c288, %c0_10] : memref<1088x128xbf16, #tpu.memory_space<vmem>>, vector<128x128xbf16>
    %8 = arith.truncf %0 : vector<16x128xf32> to vector<16x128xbf16>
    %cst = arith.constant dense<0.000000e+00> : vector<16x128xf32>
    %9 = tpu.matmul %8, %3, %cst {dimension_numbers = #tpu.dot_dimension_numbers<[1], [0], [0], [1], [0, 0, 1, 1], [], []>} : vector<16x128xbf16>, vector<128x128xbf16>, vector<16x128xf32> -> vector<16x128xf32>
    %10 = vector.extract_strided_slice %2 {offsets = [0, 0], sizes = [1, 128], strides = [1, 1]} : vector<8x128xf32> to vector<1x128xf32>
    %11 = vector.broadcast %10 : vector<1x128xf32> to vector<16x128xf32>
    %12 = arith.addf %9, %11 : vector<16x128xf32>
    %13 = arith.truncf %12 : vector<16x128xf32> to vector<16x128xbf16>
    %14 = vector.extract_strided_slice %13 {offsets = [0, 0], sizes = [16, 48], strides = [1, 1]} : vector<16x128xbf16> to vector<16x48xbf16>
    %15 = vector.extract_strided_slice %13 {offsets = [0, 64], sizes = [16, 48], strides = [1, 1]} : vector<16x128xbf16> to vector<16x48xbf16>
    %16 = tpu.concatenate %14, %15 in 0 : vector<16x48xbf16>, vector<16x48xbf16> -> vector<32x48xbf16>
    %17 = vector.extract_strided_slice %16 {offsets = [0, 0], sizes = [32, 16], strides = [1, 1]} : vector<32x48xbf16> to vector<32x16xbf16>
    %18 = vector.extract_strided_slice %16 {offsets = [0, 16], sizes = [32, 16], strides = [1, 1]} : vector<32x48xbf16> to vector<32x16xbf16>
    %19 = vector.extract_strided_slice %16 {offsets = [0, 32], sizes = [32, 16], strides = [1, 1]} : vector<32x48xbf16> to vector<32x16xbf16>
    %cst_11 = arith.constant dense<0.000000e+00> : vector<32x32xf32>
    %20 = tpu.matmul %17, %18, %cst_11 {dimension_numbers = #tpu.dot_dimension_numbers<[1], [1], [0], [0], [0, 0, 1, 0], [], []>} : vector<32x16xbf16>, vector<32x16xbf16>, vector<32x32xf32> -> vector<32x32xf32>
    %21 = arith.addf %20, %1 : vector<32x32xf32>
    %cst_12 = arith.constant dense<0xFF800000> : vector<32xf32>
    %22 = vector.multi_reduction <maximumf>, %21, %cst_12 [1] : vector<32x32xf32> to vector<32xf32>
    %23 = vector.shape_cast %22 : vector<32xf32> to vector<32x1xf32>
    %24 = vector.broadcast %23 : vector<32x1xf32> to vector<32x32xf32>
    %25 = arith.subf %21, %24 : vector<32x32xf32>
    %26 = math.exp %25 : vector<32x32xf32>
    %cst_13 = arith.constant dense<0.000000e+00> : vector<32xf32>
    %27 = vector.multi_reduction <add>, %26, %cst_13 [1] : vector<32x32xf32> to vector<32xf32>
    %28 = vector.shape_cast %27 : vector<32xf32> to vector<32x1xf32>
    %29 = tpu.reciprocal %28 {approx = true} : vector<32x1xf32> -> vector<32x1xf32>
    %30 = vector.broadcast %29 : vector<32x1xf32> to vector<32x32xf32>
    %31 = arith.mulf %26, %30 : vector<32x32xf32>
    %32 = arith.truncf %31 : vector<32x32xf32> to vector<32x32xbf16>
    %cst_14 = arith.constant dense<0.000000e+00> : vector<32x16xf32>
    %33 = tpu.matmul %32, %19, %cst_14 {dimension_numbers = #tpu.dot_dimension_numbers<[1], [0], [0], [1], [0, 0, 1, 1], [], []>} : vector<32x32xbf16>, vector<32x16xbf16>, vector<32x16xf32> -> vector<32x16xf32>
    %34 = arith.truncf %33 : vector<32x16xf32> to vector<32x16xbf16>
    %35 = vector.extract_strided_slice %34 {offsets = [0, 0], sizes = [16, 16], strides = [1, 1]} : vector<32x16xbf16> to vector<16x16xbf16>
    %cst_15 = arith.constant dense<0.000000e+00> : vector<16x128xf32>
    %36 = tpu.matmul %35, %4, %cst_15 {dimension_numbers = #tpu.dot_dimension_numbers<[1], [0], [0], [1], [0, 0, 1, 1], [], []>} : vector<16x16xbf16>, vector<16x128xbf16>, vector<16x128xf32> -> vector<16x128xf32>
    %37 = vector.extract_strided_slice %34 {offsets = [16, 0], sizes = [16, 16], strides = [1, 1]} : vector<32x16xbf16> to vector<16x16xbf16>
    %cst_16 = arith.constant dense<0.000000e+00> : vector<16x128xf32>
    %38 = tpu.matmul %37, %5, %cst_16 {dimension_numbers = #tpu.dot_dimension_numbers<[1], [0], [0], [1], [0, 0, 1, 1], [], []>} : vector<16x16xbf16>, vector<16x128xbf16>, vector<16x128xf32> -> vector<16x128xf32>
    %39 = arith.addf %36, %38 : vector<16x128xf32>
    %40 = vector.extract_strided_slice %2 {offsets = [1, 0], sizes = [1, 128], strides = [1, 1]} : vector<8x128xf32> to vector<1x128xf32>
    %41 = vector.broadcast %40 : vector<1x128xf32> to vector<16x128xf32>
    %42 = arith.addf %39, %41 : vector<16x128xf32>
    %43 = arith.addf %0, %42 : vector<16x128xf32>
    %44 = vector.extract_strided_slice %2 {offsets = [2, 0], sizes = [1, 128], strides = [1, 1]} : vector<8x128xf32> to vector<1x128xf32>
    %45 = vector.extract_strided_slice %2 {offsets = [3, 0], sizes = [1, 128], strides = [1, 1]} : vector<8x128xf32> to vector<1x128xf32>
    %cst_17 = arith.constant dense<0.000000e+00> : vector<16xf32>
    %46 = vector.multi_reduction <add>, %43, %cst_17 [1] : vector<16x128xf32> to vector<16xf32>
    %47 = vector.shape_cast %46 : vector<16xf32> to vector<16x1xf32>
    %48 = arith.mulf %43, %43 : vector<16x128xf32>
    %cst_18 = arith.constant dense<0.000000e+00> : vector<16xf32>
    %49 = vector.multi_reduction <add>, %48, %cst_18 [1] : vector<16x128xf32> to vector<16xf32>
    %50 = vector.shape_cast %49 : vector<16xf32> to vector<16x1xf32>
    %cst_19 = arith.constant 3.125000e-02 : f32
    %51 = vector.broadcast %cst_19 : f32 to vector<16x1xf32>
    %52 = arith.mulf %47, %51 : vector<16x1xf32>
    %cst_20 = arith.constant 3.125000e-02 : f32
    %53 = vector.broadcast %cst_20 : f32 to vector<16x1xf32>
    %54 = arith.mulf %50, %53 : vector<16x1xf32>
    %55 = arith.mulf %52, %52 : vector<16x1xf32>
    %56 = arith.subf %54, %55 : vector<16x1xf32>
    %cst_21 = arith.constant 0.000000e+00 : f32
    %57 = vector.broadcast %cst_21 : f32 to vector<16x1xf32>
    %58 = arith.maximumf %56, %57 : vector<16x1xf32>
    %59 = vector.broadcast %52 : vector<16x1xf32> to vector<16x128xf32>
    %60 = arith.subf %43, %59 : vector<16x128xf32>
    %cst_22 = arith.constant 9.99999996E-13 : f32
    %61 = vector.broadcast %cst_22 : f32 to vector<16x1xf32>
    %62 = arith.addf %58, %61 : vector<16x1xf32>
    %63 = math.rsqrt %62 : vector<16x1xf32>
    %64 = vector.broadcast %63 : vector<16x1xf32> to vector<16x128xf32>
    %65 = arith.mulf %60, %64 : vector<16x128xf32>
    %66 = vector.broadcast %44 : vector<1x128xf32> to vector<16x128xf32>
    %67 = arith.mulf %66, %65 : vector<16x128xf32>
    %68 = vector.broadcast %45 : vector<1x128xf32> to vector<16x128xf32>
    %69 = arith.addf %67, %68 : vector<16x128xf32>
    %70 = arith.truncf %69 : vector<16x128xf32> to vector<16x128xbf16>
    %cst_23 = arith.constant dense<0.000000e+00> : vector<16x128xf32>
    %71 = tpu.matmul %70, %6, %cst_23 {dimension_numbers = #tpu.dot_dimension_numbers<[1], [0], [0], [1], [0, 0, 1, 1], [], []>} : vector<16x128xbf16>, vector<128x128xbf16>, vector<16x128xf32> -> vector<16x128xf32>
    %72 = vector.extract_strided_slice %2 {offsets = [4, 0], sizes = [1, 128], strides = [1, 1]} : vector<8x128xf32> to vector<1x128xf32>
    %73 = vector.broadcast %72 : vector<1x128xf32> to vector<16x128xf32>
    %74 = arith.addf %71, %73 : vector<16x128xf32>
    %cst_24 = arith.constant 0.000000e+00 : f32
    %75 = vector.broadcast %cst_24 : f32 to vector<16x128xf32>
    %76 = arith.maximumf %74, %75 : vector<16x128xf32>
    %77 = arith.truncf %76 : vector<16x128xf32> to vector<16x128xbf16>
    %cst_25 = arith.constant dense<0.000000e+00> : vector<16x128xf32>
    %78 = tpu.matmul %77, %7, %cst_25 {dimension_numbers = #tpu.dot_dimension_numbers<[1], [0], [0], [1], [0, 0, 1, 1], [], []>} : vector<16x128xbf16>, vector<128x128xbf16>, vector<16x128xf32> -> vector<16x128xf32>
    %79 = vector.extract_strided_slice %2 {offsets = [5, 0], sizes = [1, 128], strides = [1, 1]} : vector<8x128xf32> to vector<1x128xf32>
    %80 = vector.broadcast %79 : vector<1x128xf32> to vector<16x128xf32>
    %81 = arith.addf %78, %80 : vector<16x128xf32>
    %82 = arith.addf %69, %81 : vector<16x128xf32>
    %83 = vector.extract_strided_slice %2 {offsets = [6, 0], sizes = [1, 128], strides = [1, 1]} : vector<8x128xf32> to vector<1x128xf32>
    %84 = vector.extract_strided_slice %2 {offsets = [7, 0], sizes = [1, 128], strides = [1, 1]} : vector<8x128xf32> to vector<1x128xf32>
    %cst_26 = arith.constant dense<0.000000e+00> : vector<16xf32>
    %85 = vector.multi_reduction <add>, %82, %cst_26 [1] : vector<16x128xf32> to vector<16xf32>
    %86 = vector.shape_cast %85 : vector<16xf32> to vector<16x1xf32>
    %87 = arith.mulf %82, %82 : vector<16x128xf32>
    %cst_27 = arith.constant dense<0.000000e+00> : vector<16xf32>
    %88 = vector.multi_reduction <add>, %87, %cst_27 [1] : vector<16x128xf32> to vector<16xf32>
    %89 = vector.shape_cast %88 : vector<16xf32> to vector<16x1xf32>
    %cst_28 = arith.constant 3.125000e-02 : f32
    %90 = vector.broadcast %cst_28 : f32 to vector<16x1xf32>
    %91 = arith.mulf %86, %90 : vector<16x1xf32>
    %cst_29 = arith.constant 3.125000e-02 : f32
    %92 = vector.broadcast %cst_29 : f32 to vector<16x1xf32>
    %93 = arith.mulf %89, %92 : vector<16x1xf32>
    %94 = arith.mulf %91, %91 : vector<16x1xf32>
    %95 = arith.subf %93, %94 : vector<16x1xf32>
    %cst_30 = arith.constant 0.000000e+00 : f32
    %96 = vector.broadcast %cst_30 : f32 to vector<16x1xf32>
    %97 = arith.maximumf %95, %96 : vector<16x1xf32>
    %98 = vector.broadcast %91 : vector<16x1xf32> to vector<16x128xf32>
    %99 = arith.subf %82, %98 : vector<16x128xf32>
    %cst_31 = arith.constant 9.99999996E-13 : f32
    %100 = vector.broadcast %cst_31 : f32 to vector<16x1xf32>
    %101 = arith.addf %97, %100 : vector<16x1xf32>
    %102 = math.rsqrt %101 : vector<16x1xf32>
    %103 = vector.broadcast %102 : vector<16x1xf32> to vector<16x128xf32>
    %104 = arith.mulf %99, %103 : vector<16x128xf32>
    %105 = vector.broadcast %83 : vector<1x128xf32> to vector<16x128xf32>
    %106 = arith.mulf %105, %104 : vector<16x128xf32>
    %107 = vector.broadcast %84 : vector<1x128xf32> to vector<16x128xf32>
    %108 = arith.addf %106, %107 : vector<16x128xf32>
    %c8 = arith.constant 8 : index
    %c0_32 = arith.constant 0 : index
    %109 = vector.load %arg3[%c8, %c0_32] : memref<24x128xf32, #tpu.memory_space<vmem>>, vector<8x128xf32>
    %c416 = arith.constant 416 : index
    %c0_33 = arith.constant 0 : index
    %110 = vector.load %arg2[%c416, %c0_33] : memref<1088x128xbf16, #tpu.memory_space<vmem>>, vector<128x128xbf16>
    %c544 = arith.constant 544 : index
    %c0_34 = arith.constant 0 : index
    %111 = vector.load %arg2[%c544, %c0_34] : memref<1088x128xbf16, #tpu.memory_space<vmem>>, vector<16x128xbf16>
    %c560 = arith.constant 560 : index
    %c0_35 = arith.constant 0 : index
    %112 = vector.load %arg2[%c560, %c0_35] : memref<1088x128xbf16, #tpu.memory_space<vmem>>, vector<16x128xbf16>
    %c576 = arith.constant 576 : index
    %c0_36 = arith.constant 0 : index
    %113 = vector.load %arg2[%c576, %c0_36] : memref<1088x128xbf16, #tpu.memory_space<vmem>>, vector<128x128xbf16>
    %c704 = arith.constant 704 : index
    %c0_37 = arith.constant 0 : index
    %114 = vector.load %arg2[%c704, %c0_37] : memref<1088x128xbf16, #tpu.memory_space<vmem>>, vector<128x128xbf16>
    %115 = arith.truncf %108 : vector<16x128xf32> to vector<16x128xbf16>
    %cst_38 = arith.constant dense<0.000000e+00> : vector<16x128xf32>
    %116 = tpu.matmul %115, %110, %cst_38 {dimension_numbers = #tpu.dot_dimension_numbers<[1], [0], [0], [1], [0, 0, 1, 1], [], []>} : vector<16x128xbf16>, vector<128x128xbf16>, vector<16x128xf32> -> vector<16x128xf32>
    %117 = vector.extract_strided_slice %109 {offsets = [0, 0], sizes = [1, 128], strides = [1, 1]} : vector<8x128xf32> to vector<1x128xf32>
    %118 = vector.broadcast %117 : vector<1x128xf32> to vector<16x128xf32>
    %119 = arith.addf %116, %118 : vector<16x128xf32>
    %120 = arith.truncf %119 : vector<16x128xf32> to vector<16x128xbf16>
    %121 = vector.extract_strided_slice %120 {offsets = [0, 0], sizes = [16, 48], strides = [1, 1]} : vector<16x128xbf16> to vector<16x48xbf16>
    %122 = vector.extract_strided_slice %120 {offsets = [0, 64], sizes = [16, 48], strides = [1, 1]} : vector<16x128xbf16> to vector<16x48xbf16>
    %123 = tpu.concatenate %121, %122 in 0 : vector<16x48xbf16>, vector<16x48xbf16> -> vector<32x48xbf16>
    %124 = vector.extract_strided_slice %123 {offsets = [0, 0], sizes = [32, 16], strides = [1, 1]} : vector<32x48xbf16> to vector<32x16xbf16>
    %125 = vector.extract_strided_slice %123 {offsets = [0, 16], sizes = [32, 16], strides = [1, 1]} : vector<32x48xbf16> to vector<32x16xbf16>
    %126 = vector.extract_strided_slice %123 {offsets = [0, 32], sizes = [32, 16], strides = [1, 1]} : vector<32x48xbf16> to vector<32x16xbf16>
    %cst_39 = arith.constant dense<0.000000e+00> : vector<32x32xf32>
    %127 = tpu.matmul %124, %125, %cst_39 {dimension_numbers = #tpu.dot_dimension_numbers<[1], [1], [0], [0], [0, 0, 1, 0], [], []>} : vector<32x16xbf16>, vector<32x16xbf16>, vector<32x32xf32> -> vector<32x32xf32>
    %128 = arith.addf %127, %1 : vector<32x32xf32>
    %cst_40 = arith.constant dense<0xFF800000> : vector<32xf32>
    %129 = vector.multi_reduction <maximumf>, %128, %cst_40 [1] : vector<32x32xf32> to vector<32xf32>
    %130 = vector.shape_cast %129 : vector<32xf32> to vector<32x1xf32>
    %131 = vector.broadcast %130 : vector<32x1xf32> to vector<32x32xf32>
    %132 = arith.subf %128, %131 : vector<32x32xf32>
    %133 = math.exp %132 : vector<32x32xf32>
    %cst_41 = arith.constant dense<0.000000e+00> : vector<32xf32>
    %134 = vector.multi_reduction <add>, %133, %cst_41 [1] : vector<32x32xf32> to vector<32xf32>
    %135 = vector.shape_cast %134 : vector<32xf32> to vector<32x1xf32>
    %136 = tpu.reciprocal %135 {approx = true} : vector<32x1xf32> -> vector<32x1xf32>
    %137 = vector.broadcast %136 : vector<32x1xf32> to vector<32x32xf32>
    %138 = arith.mulf %133, %137 : vector<32x32xf32>
    %139 = arith.truncf %138 : vector<32x32xf32> to vector<32x32xbf16>
    %cst_42 = arith.constant dense<0.000000e+00> : vector<32x16xf32>
    %140 = tpu.matmul %139, %126, %cst_42 {dimension_numbers = #tpu.dot_dimension_numbers<[1], [0], [0], [1], [0, 0, 1, 1], [], []>} : vector<32x32xbf16>, vector<32x16xbf16>, vector<32x16xf32> -> vector<32x16xf32>
    %141 = arith.truncf %140 : vector<32x16xf32> to vector<32x16xbf16>
    %142 = vector.extract_strided_slice %141 {offsets = [0, 0], sizes = [16, 16], strides = [1, 1]} : vector<32x16xbf16> to vector<16x16xbf16>
    %cst_43 = arith.constant dense<0.000000e+00> : vector<16x128xf32>
    %143 = tpu.matmul %142, %111, %cst_43 {dimension_numbers = #tpu.dot_dimension_numbers<[1], [0], [0], [1], [0, 0, 1, 1], [], []>} : vector<16x16xbf16>, vector<16x128xbf16>, vector<16x128xf32> -> vector<16x128xf32>
    %144 = vector.extract_strided_slice %141 {offsets = [16, 0], sizes = [16, 16], strides = [1, 1]} : vector<32x16xbf16> to vector<16x16xbf16>
    %cst_44 = arith.constant dense<0.000000e+00> : vector<16x128xf32>
    %145 = tpu.matmul %144, %112, %cst_44 {dimension_numbers = #tpu.dot_dimension_numbers<[1], [0], [0], [1], [0, 0, 1, 1], [], []>} : vector<16x16xbf16>, vector<16x128xbf16>, vector<16x128xf32> -> vector<16x128xf32>
    %146 = arith.addf %143, %145 : vector<16x128xf32>
    %147 = vector.extract_strided_slice %109 {offsets = [1, 0], sizes = [1, 128], strides = [1, 1]} : vector<8x128xf32> to vector<1x128xf32>
    %148 = vector.broadcast %147 : vector<1x128xf32> to vector<16x128xf32>
    %149 = arith.addf %146, %148 : vector<16x128xf32>
    %150 = arith.addf %108, %149 : vector<16x128xf32>
    %151 = vector.extract_strided_slice %109 {offsets = [2, 0], sizes = [1, 128], strides = [1, 1]} : vector<8x128xf32> to vector<1x128xf32>
    %152 = vector.extract_strided_slice %109 {offsets = [3, 0], sizes = [1, 128], strides = [1, 1]} : vector<8x128xf32> to vector<1x128xf32>
    %cst_45 = arith.constant dense<0.000000e+00> : vector<16xf32>
    %153 = vector.multi_reduction <add>, %150, %cst_45 [1] : vector<16x128xf32> to vector<16xf32>
    %154 = vector.shape_cast %153 : vector<16xf32> to vector<16x1xf32>
    %155 = arith.mulf %150, %150 : vector<16x128xf32>
    %cst_46 = arith.constant dense<0.000000e+00> : vector<16xf32>
    %156 = vector.multi_reduction <add>, %155, %cst_46 [1] : vector<16x128xf32> to vector<16xf32>
    %157 = vector.shape_cast %156 : vector<16xf32> to vector<16x1xf32>
    %cst_47 = arith.constant 3.125000e-02 : f32
    %158 = vector.broadcast %cst_47 : f32 to vector<16x1xf32>
    %159 = arith.mulf %154, %158 : vector<16x1xf32>
    %cst_48 = arith.constant 3.125000e-02 : f32
    %160 = vector.broadcast %cst_48 : f32 to vector<16x1xf32>
    %161 = arith.mulf %157, %160 : vector<16x1xf32>
    %162 = arith.mulf %159, %159 : vector<16x1xf32>
    %163 = arith.subf %161, %162 : vector<16x1xf32>
    %cst_49 = arith.constant 0.000000e+00 : f32
    %164 = vector.broadcast %cst_49 : f32 to vector<16x1xf32>
    %165 = arith.maximumf %163, %164 : vector<16x1xf32>
    %166 = vector.broadcast %159 : vector<16x1xf32> to vector<16x128xf32>
    %167 = arith.subf %150, %166 : vector<16x128xf32>
    %cst_50 = arith.constant 9.99999996E-13 : f32
    %168 = vector.broadcast %cst_50 : f32 to vector<16x1xf32>
    %169 = arith.addf %165, %168 : vector<16x1xf32>
    %170 = math.rsqrt %169 : vector<16x1xf32>
    %171 = vector.broadcast %170 : vector<16x1xf32> to vector<16x128xf32>
    %172 = arith.mulf %167, %171 : vector<16x128xf32>
    %173 = vector.broadcast %151 : vector<1x128xf32> to vector<16x128xf32>
    %174 = arith.mulf %173, %172 : vector<16x128xf32>
    %175 = vector.broadcast %152 : vector<1x128xf32> to vector<16x128xf32>
    %176 = arith.addf %174, %175 : vector<16x128xf32>
    %177 = arith.truncf %176 : vector<16x128xf32> to vector<16x128xbf16>
    %cst_51 = arith.constant dense<0.000000e+00> : vector<16x128xf32>
    %178 = tpu.matmul %177, %113, %cst_51 {dimension_numbers = #tpu.dot_dimension_numbers<[1], [0], [0], [1], [0, 0, 1, 1], [], []>} : vector<16x128xbf16>, vector<128x128xbf16>, vector<16x128xf32> -> vector<16x128xf32>
    %179 = vector.extract_strided_slice %109 {offsets = [4, 0], sizes = [1, 128], strides = [1, 1]} : vector<8x128xf32> to vector<1x128xf32>
    %180 = vector.broadcast %179 : vector<1x128xf32> to vector<16x128xf32>
    %181 = arith.addf %178, %180 : vector<16x128xf32>
    %cst_52 = arith.constant 0.000000e+00 : f32
    %182 = vector.broadcast %cst_52 : f32 to vector<16x128xf32>
    %183 = arith.maximumf %181, %182 : vector<16x128xf32>
    %184 = arith.truncf %183 : vector<16x128xf32> to vector<16x128xbf16>
    %cst_53 = arith.constant dense<0.000000e+00> : vector<16x128xf32>
    %185 = tpu.matmul %184, %114, %cst_53 {dimension_numbers = #tpu.dot_dimension_numbers<[1], [0], [0], [1], [0, 0, 1, 1], [], []>} : vector<16x128xbf16>, vector<128x128xbf16>, vector<16x128xf32> -> vector<16x128xf32>
    %186 = vector.extract_strided_slice %109 {offsets = [5, 0], sizes = [1, 128], strides = [1, 1]} : vector<8x128xf32> to vector<1x128xf32>
    %187 = vector.broadcast %186 : vector<1x128xf32> to vector<16x128xf32>
    %188 = arith.addf %185, %187 : vector<16x128xf32>
    %189 = arith.addf %176, %188 : vector<16x128xf32>
    %190 = vector.extract_strided_slice %109 {offsets = [6, 0], sizes = [1, 128], strides = [1, 1]} : vector<8x128xf32> to vector<1x128xf32>
    %191 = vector.extract_strided_slice %109 {offsets = [7, 0], sizes = [1, 128], strides = [1, 1]} : vector<8x128xf32> to vector<1x128xf32>
    %cst_54 = arith.constant dense<0.000000e+00> : vector<16xf32>
    %192 = vector.multi_reduction <add>, %189, %cst_54 [1] : vector<16x128xf32> to vector<16xf32>
    %193 = vector.shape_cast %192 : vector<16xf32> to vector<16x1xf32>
    %194 = arith.mulf %189, %189 : vector<16x128xf32>
    %cst_55 = arith.constant dense<0.000000e+00> : vector<16xf32>
    %195 = vector.multi_reduction <add>, %194, %cst_55 [1] : vector<16x128xf32> to vector<16xf32>
    %196 = vector.shape_cast %195 : vector<16xf32> to vector<16x1xf32>
    %cst_56 = arith.constant 3.125000e-02 : f32
    %197 = vector.broadcast %cst_56 : f32 to vector<16x1xf32>
    %198 = arith.mulf %193, %197 : vector<16x1xf32>
    %cst_57 = arith.constant 3.125000e-02 : f32
    %199 = vector.broadcast %cst_57 : f32 to vector<16x1xf32>
    %200 = arith.mulf %196, %199 : vector<16x1xf32>
    %201 = arith.mulf %198, %198 : vector<16x1xf32>
    %202 = arith.subf %200, %201 : vector<16x1xf32>
    %cst_58 = arith.constant 0.000000e+00 : f32
    %203 = vector.broadcast %cst_58 : f32 to vector<16x1xf32>
    %204 = arith.maximumf %202, %203 : vector<16x1xf32>
    %205 = vector.broadcast %198 : vector<16x1xf32> to vector<16x128xf32>
    %206 = arith.subf %189, %205 : vector<16x128xf32>
    %cst_59 = arith.constant 9.99999996E-13 : f32
    %207 = vector.broadcast %cst_59 : f32 to vector<16x1xf32>
    %208 = arith.addf %204, %207 : vector<16x1xf32>
    %209 = math.rsqrt %208 : vector<16x1xf32>
    %210 = vector.broadcast %209 : vector<16x1xf32> to vector<16x128xf32>
    %211 = arith.mulf %206, %210 : vector<16x128xf32>
    %212 = vector.broadcast %190 : vector<1x128xf32> to vector<16x128xf32>
    %213 = arith.mulf %212, %211 : vector<16x128xf32>
    %214 = vector.broadcast %191 : vector<1x128xf32> to vector<16x128xf32>
    %215 = arith.addf %213, %214 : vector<16x128xf32>
    %c16 = arith.constant 16 : index
    %c0_60 = arith.constant 0 : index
    %216 = vector.load %arg3[%c16, %c0_60] : memref<24x128xf32, #tpu.memory_space<vmem>>, vector<8x128xf32>
    %c832 = arith.constant 832 : index
    %c0_61 = arith.constant 0 : index
    %217 = vector.load %arg2[%c832, %c0_61] : memref<1088x128xbf16, #tpu.memory_space<vmem>>, vector<128x128xbf16>
    %c960 = arith.constant 960 : index
    %c0_62 = arith.constant 0 : index
    %218 = vector.load %arg2[%c960, %c0_62] : memref<1088x128xbf16, #tpu.memory_space<vmem>>, vector<128x128xbf16>
    %cst_63 = arith.constant dense<0.000000e+00> : vector<128xf32>
    %219 = vector.multi_reduction <add>, %215, %cst_63 [0] : vector<16x128xf32> to vector<128xf32>
    %220 = vector.shape_cast %219 : vector<128xf32> to vector<1x128xf32>
    %cst_64 = arith.constant 1.600000e+01 : f32
    %221 = vector.broadcast %cst_64 : f32 to vector<1x128xf32>
    %222 = arith.divf %220, %221 : vector<1x128xf32>
    %223 = vector.broadcast %222 : vector<1x128xf32> to vector<16x128xf32>
    %224 = arith.subf %215, %223 : vector<16x128xf32>
    %225 = arith.mulf %224, %224 : vector<16x128xf32>
    %cst_65 = arith.constant dense<0.000000e+00> : vector<128xf32>
    %226 = vector.multi_reduction <add>, %225, %cst_65 [0] : vector<16x128xf32> to vector<128xf32>
    %227 = vector.shape_cast %226 : vector<128xf32> to vector<1x128xf32>
    %cst_66 = arith.constant 1.600000e+01 : f32
    %228 = vector.broadcast %cst_66 : f32 to vector<1x128xf32>
    %229 = arith.divf %227, %228 : vector<1x128xf32>
    %230 = vector.extract_strided_slice %216 {offsets = [0, 0], sizes = [1, 128], strides = [1, 1]} : vector<8x128xf32> to vector<1x128xf32>
    %231 = vector.broadcast %222 : vector<1x128xf32> to vector<16x128xf32>
    %232 = arith.subf %215, %231 : vector<16x128xf32>
    %cst_67 = arith.constant 9.99999974E-6 : f32
    %233 = vector.broadcast %cst_67 : f32 to vector<1x128xf32>
    %234 = arith.addf %229, %233 : vector<1x128xf32>
    %235 = math.rsqrt %234 : vector<1x128xf32>
    %236 = vector.broadcast %235 : vector<1x128xf32> to vector<16x128xf32>
    %237 = arith.mulf %232, %236 : vector<16x128xf32>
    %238 = vector.broadcast %230 : vector<1x128xf32> to vector<16x128xf32>
    %239 = arith.mulf %238, %237 : vector<16x128xf32>
    %240 = vector.extract_strided_slice %216 {offsets = [1, 0], sizes = [1, 128], strides = [1, 1]} : vector<8x128xf32> to vector<1x128xf32>
    %241 = vector.broadcast %240 : vector<1x128xf32> to vector<16x128xf32>
    %242 = arith.addf %239, %241 : vector<16x128xf32>
    %243 = arith.truncf %242 : vector<16x128xf32> to vector<16x128xbf16>
    %cst_68 = arith.constant dense<0.000000e+00> : vector<16x128xf32>
    %244 = tpu.matmul %243, %217, %cst_68 {dimension_numbers = #tpu.dot_dimension_numbers<[1], [0], [0], [1], [0, 0, 1, 1], [], []>} : vector<16x128xbf16>, vector<128x128xbf16>, vector<16x128xf32> -> vector<16x128xf32>
    %245 = vector.extract_strided_slice %216 {offsets = [2, 0], sizes = [1, 128], strides = [1, 1]} : vector<8x128xf32> to vector<1x128xf32>
    %246 = vector.broadcast %245 : vector<1x128xf32> to vector<16x128xf32>
    %247 = arith.addf %244, %246 : vector<16x128xf32>
    %248 = arith.negf %247 : vector<16x128xf32>
    %249 = math.exp %248 : vector<16x128xf32>
    %cst_69 = arith.constant 1.000000e+00 : f32
    %250 = vector.broadcast %cst_69 : f32 to vector<16x128xf32>
    %251 = arith.addf %250, %249 : vector<16x128xf32>
    %252 = arith.divf %250, %251 : vector<16x128xf32>
    %253 = vector.extract_strided_slice %252 {offsets = [0, 0], sizes = [8, 128], strides = [1, 1]} : vector<16x128xf32> to vector<8x128xf32>
    %254 = vector.extract_strided_slice %252 {offsets = [8, 0], sizes = [8, 128], strides = [1, 1]} : vector<16x128xf32> to vector<8x128xf32>
    %255 = arith.addf %253, %254 : vector<8x128xf32>
    %cst_70 = arith.constant 5.000000e-01 : f32
    %256 = vector.broadcast %cst_70 : f32 to vector<8x128xf32>
    %257 = arith.mulf %255, %256 : vector<8x128xf32>
    %258 = tpu.iota {dimensions = array<i32: 1>} : vector<8x128xi32>
    %cst_71 = arith.constant 5.000000e-02 : f32
    %259 = vector.broadcast %cst_71 : f32 to vector<8x128xf32>
    %260 = arith.divf %259, %257 : vector<8x128xf32>
    %261 = math.log %260 : vector<8x128xf32>
    %cst_72 = arith.constant 5.000000e-02 : f32
    %262 = vector.broadcast %cst_72 : f32 to vector<8x128xf32>
    %263 = arith.mulf %262, %261 : vector<8x128xf32>
    %cst_73 = arith.constant 1.000000e+00 : f32
    %264 = vector.broadcast %cst_73 : f32 to vector<8x128xf32>
    %265 = arith.subf %264, %257 : vector<8x128xf32>
    %cst_74 = arith.constant 0.949999988 : f32
    %266 = vector.broadcast %cst_74 : f32 to vector<8x128xf32>
    %267 = arith.divf %266, %265 : vector<8x128xf32>
    %268 = math.log %267 : vector<8x128xf32>
    %cst_75 = arith.constant 0.949999988 : f32
    %269 = vector.broadcast %cst_75 : f32 to vector<8x128xf32>
    %270 = arith.mulf %269, %268 : vector<8x128xf32>
    %271 = arith.addf %263, %270 : vector<8x128xf32>
    %c16_i32 = arith.constant 16 : i32
    %272 = vector.broadcast %c16_i32 : i32 to vector<8x128xi32>
    %273 = arith.cmpi slt, %258, %272 : vector<8x128xi32>
    %cst_76 = arith.constant 0.000000e+00 : f32
    %274 = vector.broadcast %cst_76 : f32 to vector<8x128xf32>
    %275 = arith.select %273, %271, %274 : vector<8x128xi1>, vector<8x128xf32>
    %276 = vector.shape_cast %275 : vector<8x128xf32> to vector<1x8x128xf32>
    %cst_77 = arith.constant dense<0.000000e+00> : vector<1xf32>
    %277 = vector.multi_reduction <add>, %276, %cst_77 [1, 2] : vector<1x8x128xf32> to vector<1xf32>
    %278 = vector.shape_cast %277 : vector<1xf32> to vector<1x1x1xf32>
    %279 = vector.extract %278[0, 0, 0] : f32 from vector<1x1x1xf32>
    %280 = vector.broadcast %279 : f32 to vector<1x1xf32>
    %cst_78 = arith.constant 3.000000e+00 : f32
    %281 = vector.broadcast %cst_78 : f32 to vector<1x1xf32>
    %282 = arith.mulf %281, %280 : vector<1x1xf32>
    %283 = arith.truncf %252 : vector<16x128xf32> to vector<16x128xbf16>
    %cst_79 = arith.constant dense<0.000000e+00> : vector<16x128xf32>
    %284 = tpu.matmul %283, %218, %cst_79 {dimension_numbers = #tpu.dot_dimension_numbers<[1], [0], [0], [1], [0, 0, 1, 1], [], []>} : vector<16x128xbf16>, vector<128x128xbf16>, vector<16x128xf32> -> vector<16x128xf32>
    %285 = vector.extract_strided_slice %216 {offsets = [3, 0], sizes = [1, 128], strides = [1, 1]} : vector<8x128xf32> to vector<1x128xf32>
    %286 = vector.broadcast %285 : vector<1x128xf32> to vector<16x128xf32>
    %287 = arith.addf %284, %286 : vector<16x128xf32>
    %288 = vector.extract_strided_slice %287 {offsets = [0, 0], sizes = [1, 128], strides = [1, 1]} : vector<16x128xf32> to vector<1x128xf32>
    %289 = vector.extract_strided_slice %287 {offsets = [8, 0], sizes = [1, 128], strides = [1, 1]} : vector<16x128xf32> to vector<1x128xf32>
    %290 = vector.shape_cast %282 : vector<1x1xf32> to vector<1x1xf32>
    %291 = vector.broadcast %290 : vector<1x1xf32> to vector<6x128xf32>
    %292 = tpu.concatenate %288, %289, %291 in 0 : vector<1x128xf32>, vector<1x128xf32>, vector<6x128xf32> -> vector<8x128xf32>
    %c0_80 = arith.constant 0 : index
    %c0_81 = arith.constant 0 : index
    %293 = vector.load %arg4[%c0_80, %c0_81] : memref<8x128xf32, #tpu.memory_space<vmem>>, vector<8x128xf32>
    tpu.vector_store %arg4[%c0_80, %c0_81], %292 {strides = array<i32>} : memref<8x128xf32, #tpu.memory_space<vmem>>, vector<8x128xf32>,
    return
  }
}

</mosaic_0001>

<bundles_post_ra>
// kernel: tile.8
= control target key start
LH: loop header
LB: loop body
LE: loop exit
PB: predicated region body
PF: predicated region fallthrough
CT: control target
= control target key end

     0   :  { %v14_v2 = vmov 0   ;;  %s31_s0 = inlined_call_operand.vmem [shape: pred[16], index: 0, kind: input, shape index: {}]   ;;  %s32_s1 = inlined_call_operand.vmem [shape: pred[2,16], index: 1, kind: output, shape index: {}]  }
   0x1   :  { %v4_v0 = vld [vmem:[%s31_s0] ss:$0 sm:$0xff] }
   0x2   :  { %v7_v1 = vand.u32 255, %v4_v0 }
   0x4   :  { %v8_v3 = vpack.c.b16 %v14_v2, %v7_v1 }
   0x6   :  { %v9_v4 = vpack.c.b8 %v14_v2, %v8_v3 }
   0x8   :  { %12 = vst [vmem:[%s32_s1] sm:$0x1] %v9_v4 }

// kernel: dialog_transformer_forward.1
= control target key start
LH: loop header
LB: loop body
LE: loop exit
PB: predicated region body
PF: predicated region fallthrough
CT: control target
= control target key end

     0   :  { %v2286_v0 = vmov 0.0   ;;  %vm2287_vm0 = vmmov 0   ;;  %v78_v12 = vlaneseq  ;;  %vm179_vm1 = vcmask 130048   ;;  %s2288_s10 = smov 112   ;;  %s2289_s11 = smov 64   ;;  %s2824_s2 = inlined_call_operand.vmem [shape: bf16[1088,128], index: 2, kind: input, shape index: {}]   ;;  %s2825_s0 = inlined_call_operand.vmem [shape: f32[16,128], index: 0, kind: input, shape index: {}]   ;;  %s2826_s3 = inlined_call_operand.vmem [shape: f32[24,128], index: 3, kind: input, shape index: {}]   ;;  %s2827_s1 = inlined_call_operand.vmem [shape: f32[32,32], index: 1, kind: input, shape index: {}]   ;;  %s2828_s4 = inlined_call_operand.vmem [shape: f32[8,128], index: 4, kind: output, shape index: {}]  }
   0x1   :  { %1925 = vmatprep.subr.bf16.mxu0 %v2286_v0  ;;  %v2152_v1 = vld [vmem:[%s2824_s2 + $0x38] sm:$0xff]   ;;  %1941 = vmatprep.mubr.msk.bf16.mxu0 %vm2287_vm0, %v2286_v0  ;;  %v2153_v2 = vld [vmem:[%s2824_s2 + $0x30] sm:$0xff]   ;;  %v2154_v3 = vld [vmem:[%s2824_s2 + $0x28] sm:$0xff]   ;;  %vm241_vm2 = vcmask 261120   ;;  %vm1738_vm4 = vcmask 1040384   ;;  %vm1740_vm5 = vcmask 1041408  }
   0x2   :  { %1926 = vmatpush3.bf16.msra.mxu0 %v2152_v1  ;;  %v2155_v4 = vld [vmem:[%s2824_s2 + $0x20] sm:$0xff]   ;;  %v2156_v5 = vld [vmem:[%s2824_s2 + $0x18] sm:$0xff]   ;;  %v2157_v6 = vld [vmem:[%s2824_s2 + $0x10] sm:$0xff]   ;;  %v2366_v13 = vshrl.u32 %v78_v12, 7 }
   0x3   :  { %1927 = vmatprep.subr.bf16.mxu0 %v2286_v0  ;;  %v2158_v7 = vld [vmem:[%s2824_s2 + $0x8] sm:$0xff]   ;;  %v2159_v8 = vld [vmem:[%s2824_s2] sm:$0xff]   ;;  %v2400_v32 = vld [vmem:[%s2827_s1 + $0x18] sm:$0xff] }
   0x4   :  { %v2352_v9 = vld [vmem:[%s2825_s0] sm:$0xff]  ;;  %v2357_v10 = vld [vmem:[%s2825_s0 + $0x8] sm:$0xff]  ;;  %v2369_v14 = vsub.s32 0, %v2366_v13  ;;  %v2413_v38 = vld [vmem:[%s2827_s1 + $0x10] sm:$0xff] }
   0x5   :  { %v77_v11 = vpack.c.bf16 %v2357_v10, %v2352_v9  ;;  %v2374_v15 = vld [vmem:[%s2826_s3] sm:$0xff]  ;;  %v2406_v35 = vld [vmem:[%s2827_s1 + $0x8] sm:$0xff] }
   0x6   :  { %1928 = vmatpush3.bf16.msra.mxu0 %v2153_v2  ;;  %v81_v17 = vrot.slane %v2374_v15, %v2369_v14  ;;  %v2395_v30 = vld [vmem:[%s2827_s1] sm:$0xff]  ;;  %s2290_s1 = smov 96  }
   0x7   :  { %1929 = vmatprep.subr.bf16.mxu0 %v2286_v0 }
   0xa   :  { %1930 = vmatpush3.bf16.msra.mxu0 %v2154_v3 }
   0xb   :  { %1931 = vmatprep.subr.bf16.mxu0 %v2286_v0 }
   0xe   :  { %1932 = vmatpush3.bf16.msra.mxu0 %v2155_v4 }
   0xf   :  { %1933 = vmatprep.subr.bf16.mxu0 %v2286_v0 }
  0x12   :  { %1934 = vmatpush3.bf16.msra.mxu0 %v2156_v5 }
  0x13   :  { %1935 = vmatprep.subr.bf16.mxu0 %v2286_v0 }
  0x16   :  { %1936 = vmatpush3.bf16.msra.mxu0 %v2157_v6 }
  0x17   :  { %1937 = vmatprep.subr.bf16.mxu0 %v2286_v0 }
  0x1a   :  { %1938 = vmatpush3.bf16.msra.mxu0 %v2158_v7 }
  0x1b   :  { %1939 = vmatprep.subr.bf16.mxu0 %v2286_v0 }
  0x1e   :  { %1940 = vmatpush3.bf16.msra.mxu0 %v2159_v8 }
  0x1f   :  { %1967 = vmatprep.subr.bf16.mxu0 %v2286_v0 }
  0x21   :  { %1942 = vmatmul.mubr.bf16.vlgmr.msra.gmra.mxu0 %v77_v11 }
  0x22   :  { %1969 = vmatprep.mubr.msk.bf16.mxu0 %vm2287_vm0, %v2286_v0 }
  0xe1   :  { %v164_v16 = vpop.f32.mrf.mxu0 }
  0xe2   :  { %v165_v20 = vadd.f32 %v164_v16, %v81_v17 }
  0xe3   :  { %v1943_v18 = vpop.f32.mrf.mxu0 }
  0xe5   :  { %v167_v19 = vpop.f32.mrf.mxu0 }
  0xe6   :  { %v168_v21 = vadd.f32 %v167_v19, %v81_v17 }
  0xe7   :  { %v1944_v22 = vpop.f32.mrf.mxu0 }
  0xe8   :  { %v2378_v23 = vpack.c.bf16 %v168_v21, %v165_v20 }
  0xea   :  { %175 = vrot.lane.b32.xlu1 %v2378_v23, %s2288_s10  ;;  %173 = vrot.lane.b32.xlu0 %v2378_v23, %s2289_s11 }
  0xeb   :  { %1949 = vmatprep.mubr.msk.bf16.mxu1 %vm179_vm1, %v2378_v23 }
 0x15c   :  { %v174_v24 = vpop.permute.xlu0 %173  ;;  %v176_v27 = vpop.permute.xlu1 %175 }
 0x15d   :  { %177 = vrot.lane.b32.xlu0 %v174_v24, %s2288_s10  ;;  %v187_v28 = vsel %vm179_vm1, %v176_v27, 0 }
 0x1cf   :  { %v178_v25 = vpop.permute.xlu0 %177 }
 0x1d0   :  { %2141 = vmatprep.subr.msk.bf16.mxu1 %vm179_vm1, %v178_v25  ;;  %v190_v26 = vsel %vm179_vm1, %v178_v25, 0  ;;  %v2161_v25 = vld [vmem:[%s2824_s2 + $0x40] sm:$0xff]  }
 0x1d1   :  { %1946 = vmatpush3.bf16.xpose.msra.mxu1 %v190_v26  ;;  %1968 = vmatpush3.bf16.msra.mxu0 %v2161_v25 }
 0x1d2   :  { %2142 = vmatprep.subr.msk.bf16.mxu1 %vm179_vm1, %v176_v27  ;;  %1993 = vmatprep.subr.bf16.mxu0 %v2286_v0 }
 0x1d9   :  { %1948 = vmatpush3.bf16.xpose.msra.mxu1 %v187_v28 }
 0x1e0   :  { %1950 = vmatmul.mubr.msk.bf16.vlgmr.msra.gmra.mxu1 %vm179_vm1, %v174_v24 }
 0x2a0   :  { %v1951_v29 = vpop.f32.mrf.mxu1 }
 0x2a1   :  { %v235_v41 = vadd.f32 %v1951_v29, %v2413_v38 }
 0x2a2   :  { %v226_v31 = vpop.f32.mrf.mxu1 }
 0x2a3   :  { %v227_v33 = vadd.f32 %v226_v31, %v2395_v30  ;;  %v248_v44 = vsel %vm241_vm2, %v235_v41, -inf }
 0x2a4   :  { %v1952_v34 = vpop.f32.mrf.mxu1 }
 0x2a5   :  { %v238_v36 = vadd.f32 %v1952_v34, %v2400_v32  ;;  %v242_v37 = vsel %vm241_vm2, %v227_v33, -inf  ;;  %v2447_v34 = vsub.s32 1, %v2366_v13 }
 0x2a6   :  { %v229_v39 = vpop.f32.mrf.mxu1  ;;  %243 = vmax.xlane.f32.xlu1 %v242_v37 }
 0x2a7   :  { %v230_v40 = vadd.f32 %v229_v39, %v2406_v35  ;;  %v251_v43 = vsel %vm241_vm2, %v238_v36, -inf  ;;  %v454_v37 = vrot.slane %v2374_v15, %v2447_v34 }
 0x2a9   :  { %v245_v42 = vsel %vm241_vm2, %v230_v40, -inf }
 0x2aa   :  { %246 = vmax.xlane.f32.xlu0 %v245_v42  ;;  %252 = vmax.xlane.f32.xlu1 %v251_v43 }
 0x2ae   :  { %249 = vmax.xlane.f32.xlu0 %v248_v44 }
 0x32f   :  { %v244_v45 = vpop.xlane.xlu1 %243 }
 0x330   :  { %v254_v50 = vsub.f32 %v227_v33, %v244_v45 }
 0x332   :  { %v258_v55 = vmul.f32 1.442695, %v254_v50 }
 0x333   :  { %v247_v46 = vpop.xlane.xlu0 %246  ;;  %v253_v47 = vpop.xlane.xlu1 %252 }
 0x334   :  { %v255_v48 = vsub.f32 %v230_v40, %v247_v46  ;;  %v257_v49 = vsub.f32 %v238_v36, %v253_v47 }
 0x336   :  { %v264_v51 = vmul.f32 1.442695, %v257_v49  ;;  %v260_v52 = vmul.f32 1.442695, %v255_v48 }
 0x337   :  { %v250_v53 = vpop.xlane.xlu0 %249 }
 0x338   :  { %v256_v54 = vsub.f32 %v235_v41, %v250_v53  ;;  %2220 = vpow2.f32 %v264_v51 }
 0x339   :  { %2222 = vpow2.f32 %v260_v52 }
 0x33a   :  { %v262_v56 = vmul.f32 1.442695, %v256_v54  ;;  %v2164_v54 = vld [vmem:[%s2824_s2 + $0x78] sm:$0xff]  }
 0x33c   :  { %2224 = vpow2.f32 %v262_v56  ;;  %v2166_v56 = vld [vmem:[%s2824_s2 + $0x68] sm:$0xff]  }
 0x33d   :  { %2226 = vpow2.f32 %v258_v55  ;;  %v2165_v55 = vld [vmem:[%s2824_s2 + $0x70] sm:$0xff]  }
 0x345   :  { %v2221_v57 = vpop.eup %2220 }
 0x346   :  { %v275_v58 = vsel %vm241_vm2, %v2221_v57, 0.0  ;;  %v2223_v59 = vpop.eup %2222 }
 0x347   :  { %276 = vadd.xlane.f32.xlu1 %v275_v58  ;;  %v269_v63 = vsel %vm241_vm2, %v2223_v59, 0.0  ;;  %v2168_v58 = vld [vmem:[%s2824_s2 + $0x58] sm:$0xff]  }
 0x349   :  { %v2225_v60 = vpop.eup %2224 }
 0x34a   :  { %v272_v61 = vsel %vm241_vm2, %v2225_v60, 0.0  ;;  %v2227_v62 = vpop.eup %2226 }
 0x34b   :  { %273 = vadd.xlane.f32.xlu0 %v272_v61  ;;  %270 = vadd.xlane.f32.xlu1 %v269_v63  ;;  %v266_v1 = vsel %vm241_vm2, %v2227_v62, 0.0  ;;  %v2171_v61 = vld [vmem:[%s2824_s2 + $0xc0] sm:$0xff]   ;;  %v2173_v63 = vld [vmem:[%s2824_s2 + $0xb0] sm:$0xff]  }
 0x34f   :  { %267 = vadd.xlane.f32.xlu0 %v266_v1  ;;  %v2174_v1 = vld [vmem:[%s2824_s2 + $0xa8] sm:$0xff]  }
 0x35c   :  { %288 = vrot.lane.b32.xlu1 %v2378_v23, %s2290_s1 }
 0x365   :  { %290 = vrot.lane.b32.xlu0 %v174_v24, %s2290_s1  ;;  %v2160_v24 = vld [vmem:[%s2824_s2 + $0x48] sm:$0xff]  }
 0x3d0   :  { %v277_v2 = vpop.xlane.xlu1 %276 }
 0x3d4   :  { %v274_v3 = vpop.xlane.xlu0 %273  ;;  %v271_v4 = vpop.xlane.xlu1 %270 }
 0x3d5   :  { %2228 = vrcp.f32 %v274_v3 }
 0x3d6   :  { %2230 = vrcp.f32 %v271_v4 }
 0x3d7   :  { %2232 = vrcp.f32 %v277_v2 }
 0x3d8   :  { %v268_v5 = vpop.xlane.xlu0 %267  ;;  %v289_v7 = vpop.permute.xlu1 %288 }
 0x3d9   :  { %2234 = vrcp.f32 %v268_v5 }
 0x3dc   :  { %v291_v6 = vpop.permute.xlu0 %290 }
 0x3dd   :  { %1953 = vmatprep.subr.bf16.mxu1 %v291_v6 }
 0x3de   :  { %1954 = vmatpush3.bf16.msra.mxu1 %v291_v6 }
 0x3df   :  { %1955 = vmatprep.subr.bf16.mxu1 %v289_v7 }
 0x3e2   :  { %1956 = vmatpush3.bf16.msra.mxu1 %v289_v7  ;;  %v2229_v8 = vpop.eup %2228 }
 0x3e3   :  { %1961 = vmatprep.subr.bf16.mxu1 %v2286_v0  ;;  %v2231_v11 = vpop.eup %2230  ;;  %v284_v18 = vmul.f32 %v2229_v8, %v2225_v60  ;;  %v2170_v60 = vld [vmem:[%s2824_s2 + $0xc8] sm:$0xff]  }
 0x3e4   :  { %v2233_v16 = vpop.eup %2232  ;;  %v283_v20 = vmul.f32 %v2231_v11, %v2223_v59  ;;  %v2169_v59 = vld [vmem:[%s2824_s2 + $0x50] sm:$0xff]  }
 0x3e5   :  { %v285_v21 = vmul.f32 %v2233_v16, %v2221_v57  ;;  %v2167_v57 = vld [vmem:[%s2824_s2 + $0x60] sm:$0xff]  }
 0x3e6   :  { %v2235_v17 = vpop.eup %2234 }
 0x3e7   :  { %v282_v19 = vmul.f32 %v2235_v17, %v2227_v62  ;;  %v287_v23 = vpack.c.bf16 %v285_v21, %v284_v18  ;;  %v2172_v62 = vld [vmem:[%s2824_s2 + $0xb8] sm:$0xff]  }
 0x3e9   :  { %v286_v22 = vpack.c.bf16 %v283_v20, %v282_v19 }
 0x3eb   :  { %1957 = vmatprep.mubr.msk.bf16.mxu1 %vm241_vm2, %v286_v22 }
 0x3ec   :  { %1958 = vmatmul.mubr.msk.bf16.vlgmr.msra.gmra.mxu1 %vm241_vm2, %v287_v23 }
 0x3ed   :  { %1963 = vmatprep.mubr.msk.bf16.mxu1 %vm2287_vm0, %v2286_v0  ;;  %1962 = vmatpush3.bf16.msra.mxu1 %v2160_v24  ;;  %v2516_v24 = vsub.s32 2, %v2366_v13 }
 0x3ee   :  { %1973 = vmatprep.subr.bf16.mxu1 %v2286_v0 }
 0x4ac   :  { %v1959_v26 = vpop.f32.mrf.mxu1 }
 0x4ae   :  { %v334_v27 = vpop.f32.mrf.mxu1 }
 0x4b0   :  { %v1960_v28 = vpop.f32.mrf.mxu1 }
 0x4b1   :  { %v350_v29 = vpack.c.bf16 %v1960_v28, %v1959_v26  ;;  %v490_v26 = vrot.slane %v2374_v15, %v2516_v24 }
 0x4b2   :  { %v337_v31 = vpop.f32.mrf.mxu1 }
 0x4b3   :  { %v349_v33 = vpack.c.bf16 %v337_v31, %v334_v27  ;;  %1964 = vmatmul.mubr.msk.bf16.vlgmr.msra.gmra.mxu1 %vm179_vm1, %v350_v29  ;;  %v2522_v27 = vsub.s32 3, %v2366_v13 }
 0x4b4   :  { %1989 = vmatprep.mubr.msk.bf16.mxu1 %vm2287_vm0, %v2286_v0 }
 0x4b5   :  { %1970 = vmatmul.mubr.msk.bf16.vlgmr.msra.gmra.mxu0 %vm179_vm1, %v349_v33 }
 0x4b6   :  { %2009 = vmatprep.mubr.msk.bf16.mxu0 %vm2287_vm0, %v2286_v0  ;;  %1994 = vmatpush3.bf16.msra.mxu0 %v2170_v60 }
 0x4b7   :  { %1995 = vmatprep.subr.bf16.mxu0 %v2286_v0 }
 0x4ba   :  { %1996 = vmatpush3.bf16.msra.mxu0 %v2171_v61 }
 0x4bb   :  { %1997 = vmatprep.subr.bf16.mxu0 %v2286_v0 }
 0x4be   :  { %1998 = vmatpush3.bf16.msra.mxu0 %v2172_v62 }
 0x4bf   :  { %1999 = vmatprep.subr.bf16.mxu0 %v2286_v0 }
 0x4c2   :  { %2000 = vmatpush3.bf16.msra.mxu0 %v2173_v63 }
 0x4c3   :  { %2001 = vmatprep.subr.bf16.mxu0 %v2286_v0 }
 0x4c6   :  { %2002 = vmatpush3.bf16.msra.mxu0 %v2174_v1 }
 0x4c7   :  { %2003 = vmatprep.subr.bf16.mxu0 %v2286_v0 }
 0x573   :  { %v394_v36 = vpop.f32.mrf.mxu1 }
 0x575   :  { %v1965_v39 = vpop.f32.mrf.mxu1  ;;  %v444_v40 = vpop.f32.mrf.mxu0 }
 0x576   :  { %v445_v41 = vadd.f32 %v444_v40, %v394_v36  ;;  %v496_v39 = vrot.slane %v2374_v15, %v2522_v27 }
 0x577   :  { %v397_v42 = vpop.f32.mrf.mxu1  ;;  %v1971_v43 = vpop.f32.mrf.mxu0 }
 0x578   :  { %v455_v44 = vadd.f32 %v454_v37, %v445_v41 }
 0x579   :  { %v1966_v45 = vpop.f32.mrf.mxu1  ;;  %v447_v46 = vpop.f32.mrf.mxu0 }
 0x57a   :  { %v448_v47 = vadd.f32 %v447_v46, %v397_v42  ;;  %v2452_v48 = vadd.f32 %v455_v44, %v2352_v9  ;;  %v2162_v9 = vld [vmem:[%s2824_s2 + $0x88] sm:$0xff]   ;;  %v2175_v44 = vld [vmem:[%s2824_s2 + $0xa0] sm:$0xff]   ;;  %v2176_v45 = vld [vmem:[%s2824_s2 + $0x98] sm:$0xff]  }
 0x57b   :  { %v1972_v49 = vpop.f32.mrf.mxu0  ;;  %1974 = vmatpush3.bf16.msra.mxu1 %v2162_v9  ;;  %2004 = vmatpush3.bf16.msra.mxu0 %v2175_v44  ;;  %v2177_v46 = vld [vmem:[%s2824_s2 + $0x90] sm:$0xff]  }
 0x57c   :  { %v456_v50 = vadd.f32 %v454_v37, %v448_v47  ;;  %459 = vadd.xlane.f32.xlu1 %v2452_v48  ;;  %v463_v53 = vmul.f32 %v2452_v48, %v2452_v48  ;;  %1975 = vmatprep.subr.bf16.mxu1 %v2286_v0  ;;  %v502_v47 = vsub.s32 4, %v2366_v13 }
 0x57d   :  { %2005 = vmatprep.subr.bf16.mxu0 %v2286_v0 }
 0x57e   :  { %v2456_v51 = vadd.f32 %v456_v50, %v2357_v10  ;;  %v2163_v10 = vld [vmem:[%s2824_s2 + $0x80] sm:$0xff]  }
 0x57f   :  { %1976 = vmatpush3.bf16.msra.mxu1 %v2163_v10  ;;  %2006 = vmatpush3.bf16.msra.mxu0 %v2176_v45 }
 0x580   :  { %461 = vadd.xlane.f32.xlu0 %v2456_v51  ;;  %v464_v52 = vmul.f32 %v2456_v51, %v2456_v51  ;;  %1977 = vmatprep.subr.bf16.mxu1 %v2286_v0 }
 0x581   :  { %2007 = vmatprep.subr.bf16.mxu0 %v2286_v0 }
 0x582   :  { %467 = vadd.xlane.f32.xlu1 %v464_v52 }
 0x583   :  { %1978 = vmatpush3.bf16.msra.mxu1 %v2164_v54  ;;  %2008 = vmatpush3.bf16.msra.mxu0 %v2177_v46 }
 0x584   :  { %465 = vadd.xlane.f32.xlu0 %v463_v53  ;;  %1979 = vmatprep.subr.bf16.mxu1 %v2286_v0 }
 0x587   :  { %1980 = vmatpush3.bf16.msra.mxu1 %v2165_v55 }
 0x588   :  { %1981 = vmatprep.subr.bf16.mxu1 %v2286_v0 }
 0x58b   :  { %1982 = vmatpush3.bf16.msra.mxu1 %v2166_v56  ;;  %v598_v56 = vsub.s32 5, %v2366_v13 }
 0x58c   :  { %1983 = vmatprep.subr.bf16.mxu1 %v2286_v0 }
 0x58f   :  { %1984 = vmatpush3.bf16.msra.mxu1 %v2167_v57  ;;  %v599_v57 = vrot.slane %v2374_v15, %v598_v56 }
 0x590   :  { %1985 = vmatprep.subr.bf16.mxu1 %v2286_v0 }
 0x593   :  { %1986 = vmatpush3.bf16.msra.mxu1 %v2168_v58 }
 0x594   :  { %1987 = vmatprep.subr.bf16.mxu1 %v2286_v0 }
 0x597   :  { %1988 = vmatpush3.bf16.msra.mxu1 %v2169_v59 }
 0x598   :  { %2013 = vmatprep.subr.bf16.mxu1 %v2286_v0 }
 0x605   :  { %v460_v2 = vpop.xlane.xlu1 %459 }
 0x606   :  { %v469_v4 = vmul.f32 0.03125, %v460_v2 }
 0x608   :  { %v473_v16 = vmul.f32 %v469_v4, %v469_v4  ;;  %v479_v29 = vsub.f32 %v2452_v48, %v469_v4  ;;  %v503_v48 = vrot.slane %v2374_v15, %v502_v47 }
 0x609   :  { %v462_v3 = vpop.xlane.xlu0 %461 }
 0x60a   :  { %v470_v5 = vmul.f32 0.03125, %v462_v3 }
 0x60b   :  { %v468_v6 = vpop.xlane.xlu1 %467 }
 0x60c   :  { %v474_v7 = vmul.f32 %v470_v5, %v470_v5  ;;  %v472_v8 = vmul.f32 0.03125, %v468_v6  ;;  %v480_v25 = vsub.f32 %v2456_v51, %v470_v5  ;;  %v2178_v5 = vld [vmem:[%s2824_s2 + $0x108] sm:$0xff]   ;;  %v2179_v6 = vld [vmem:[%s2824_s2 + $0x100] sm:$0xff]  }
 0x60d   :  { %v466_v11 = vpop.xlane.xlu0 %465 }
 0x60e   :  { %v476_v17 = vsub.f32 %v472_v8, %v474_v7  ;;  %v471_v18 = vmul.f32 0.03125, %v466_v11  ;;  %v2180_v7 = vld [vmem:[%s2824_s2 + $0xf8] sm:$0xff]   ;;  %v2181_v8 = vld [vmem:[%s2824_s2 + $0xf0] sm:$0xff]   ;;  %v2182_v11 = vld [vmem:[%s2824_s2 + $0xe8] sm:$0xff]  }
 0x610   :  { %v478_v19 = vmax.f32 %v476_v17, 0.0  ;;  %v475_v20 = vsub.f32 %v471_v18, %v473_v16  ;;  %v2183_v16 = vld [vmem:[%s2824_s2 + $0xe0] sm:$0xff]   ;;  %v2184_v17 = vld [vmem:[%s2824_s2 + $0xd8] sm:$0xff]   ;;  %v2185_v18 = vld [vmem:[%s2824_s2 + $0xd0] sm:$0xff]  }
 0x612   :  { %v482_v21 = vadd.f32 1e-12, %v478_v19  ;;  %v477_v22 = vmax.f32 %v475_v20, 0.0 }
 0x614   :  { %2236 = vrsqrt.f32 %v482_v21  ;;  %v481_v23 = vadd.f32 1e-12, %v477_v22 }
 0x616   :  { %2238 = vrsqrt.f32 %v481_v23 }
 0x621   :  { %v2237_v28 = vpop.eup %2236 }
 0x622   :  { %v486_v31 = vmul.f32 %v2237_v28, %v480_v25 }
 0x623   :  { %v2239_v33 = vpop.eup %2238 }
 0x624   :  { %v485_v36 = vmul.f32 %v2239_v33, %v479_v29  ;;  %v492_v37 = vmul.f32 %v490_v26, %v486_v31 }
 0x626   :  { %v491_v40 = vmul.f32 %v490_v26, %v485_v36  ;;  %v498_v42 = vadd.f32 %v496_v39, %v492_v37 }
 0x628   :  { %v497_v41 = vadd.f32 %v496_v39, %v491_v40 }
 0x62a   :  { %v499_v43 = vpack.c.bf16 %v498_v42, %v497_v41 }
 0x62c   :  { %1990 = vmatmul.mubr.bf16.vlgmr.msra.gmra.mxu1 %v499_v43 }
 0x62d   :  { %2029 = vmatprep.mubr.msk.bf16.mxu1 %vm2287_vm0, %v2286_v0  ;;  %2014 = vmatpush3.bf16.msra.mxu1 %v2178_v5 }
 0x62e   :  { %2015 = vmatprep.subr.bf16.mxu1 %v2286_v0 }
 0x631   :  { %2016 = vmatpush3.bf16.msra.mxu1 %v2179_v6 }
 0x632   :  { %2017 = vmatprep.subr.bf16.mxu1 %v2286_v0 }
 0x635   :  { %2018 = vmatpush3.bf16.msra.mxu1 %v2180_v7 }
 0x636   :  { %2019 = vmatprep.subr.bf16.mxu1 %v2286_v0 }
 0x639   :  { %2020 = vmatpush3.bf16.msra.mxu1 %v2181_v8 }
 0x63a   :  { %2021 = vmatprep.subr.bf16.mxu1 %v2286_v0 }
 0x63d   :  { %2022 = vmatpush3.bf16.msra.mxu1 %v2182_v11 }
 0x63e   :  { %2023 = vmatprep.subr.bf16.mxu1 %v2286_v0 }
 0x641   :  { %2024 = vmatpush3.bf16.msra.mxu1 %v2183_v16 }
 0x642   :  { %2025 = vmatprep.subr.bf16.mxu1 %v2286_v0 }
 0x645   :  { %2026 = vmatpush3.bf16.msra.mxu1 %v2184_v17 }
 0x646   :  { %2027 = vmatprep.subr.bf16.mxu1 %v2286_v0 }
 0x649   :  { %2028 = vmatpush3.bf16.msra.mxu1 %v2185_v18 }
 0x64a   :  { %2055 = vmatprep.subr.bf16.mxu1 %v2286_v0 }
 0x6ec   :  { %v586_v49 = vpop.f32.mrf.mxu1 }
 0x6ed   :  { %v587_v51 = vadd.f32 %v586_v49, %v503_v48 }
 0x6ee   :  { %v1991_v50 = vpop.f32.mrf.mxu1 }
 0x6ef   :  { %v593_v10 = vmax.f32 %v587_v51, 0.0 }
 0x6f0   :  { %v589_v52 = vpop.f32.mrf.mxu1 }
 0x6f1   :  { %v590_v53 = vadd.f32 %v589_v52, %v503_v48  ;;  %v727_v48 = vsub.s32 7, %v2366_v13 }
 0x6f2   :  { %v1992_v9 = vpop.f32.mrf.mxu1 }
 0x6f3   :  { %v594_v54 = vmax.f32 %v590_v53, 0.0  ;;  %v728_v53 = vrot.slane %v2374_v15, %v727_v48 }
 0x6f5   :  { %v595_v55 = vpack.c.bf16 %v594_v54, %v593_v10 }
 0x6f7   :  { %2010 = vmatmul.mubr.bf16.vlgmr.msra.gmra.mxu0 %v595_v55 }
 0x7b7   :  { %v682_v58 = vpop.f32.mrf.mxu0 }
 0x7b8   :  { %v683_v59 = vadd.f32 %v682_v58, %v599_v57 }
 0x7b9   :  { %v2011_v60 = vpop.f32.mrf.mxu0 }
 0x7ba   :  { %v689_v61 = vadd.f32 %v683_v59, %v497_v41 }
 0x7bb   :  { %v685_v62 = vpop.f32.mrf.mxu0 }
 0x7bc   :  { %v686_v63 = vadd.f32 %v685_v62, %v599_v57  ;;  %691 = vadd.xlane.f32.xlu0 %v689_v61  ;;  %v695_v3 = vmul.f32 %v689_v61, %v689_v61  ;;  %v2599_v57 = vld [vmem:[%s2826_s3 + $0x8] sm:$0xff] }
 0x7bd   :  { %v2012_v1 = vpop.f32.mrf.mxu0 }
 0x7be   :  { %v690_v2 = vadd.f32 %v686_v63, %v498_v42  ;;  %v721_v42 = vsub.s32 6, %v2366_v13 }
 0x7c0   :  { %697 = vadd.xlane.f32.xlu0 %v695_v3  ;;  %693 = vadd.xlane.f32.xlu1 %v690_v2  ;;  %v696_v4 = vmul.f32 %v690_v2, %v690_v2  ;;  %v722_v46 = vrot.slane %v2374_v15, %v721_v42  ;;  %v788_v15 = vrot.slane %v2599_v57, %v2369_v14 }
 0x7c4   :  { %699 = vadd.xlane.f32.xlu1 %v696_v4 }
 0x845   :  { %v692_v19 = vpop.xlane.xlu0 %691 }
 0x846   :  { %v701_v20 = vmul.f32 0.03125, %v692_v19 }
 0x848   :  { %v705_v23 = vmul.f32 %v701_v20, %v701_v20  ;;  %v711_v43 = vsub.f32 %v689_v61, %v701_v20 }
 0x849   :  { %v698_v21 = vpop.xlane.xlu0 %697  ;;  %v694_v22 = vpop.xlane.xlu1 %693 }
 0x84a   :  { %v703_v25 = vmul.f32 0.03125, %v698_v21  ;;  %v702_v26 = vmul.f32 0.03125, %v694_v22 }
 0x84c   :  { %v707_v28 = vsub.f32 %v703_v25, %v705_v23  ;;  %v706_v33 = vmul.f32 %v702_v26, %v702_v26  ;;  %v712_v49 = vsub.f32 %v690_v2, %v702_v26 }
 0x84d   :  { %v700_v29 = vpop.xlane.xlu1 %699 }
 0x84e   :  { %v709_v31 = vmax.f32 %v707_v28, 0.0  ;;  %v704_v36 = vmul.f32 0.03125, %v700_v29 }
 0x850   :  { %v713_v37 = vadd.f32 1e-12, %v709_v31  ;;  %v708_v39 = vsub.f32 %v704_v36, %v706_v33 }
 0x852   :  { %2240 = vrsqrt.f32 %v713_v37  ;;  %v710_v40 = vmax.f32 %v708_v39, 0.0 }
 0x854   :  { %v714_v41 = vadd.f32 1e-12, %v710_v40 }
 0x856   :  { %2242 = vrsqrt.f32 %v714_v41 }
 0x85f   :  { %v2241_v44 = vpop.eup %2240 }
 0x860   :  { %v717_v45 = vmul.f32 %v2241_v44, %v711_v43 }
 0x862   :  { %v723_v52 = vmul.f32 %v722_v46, %v717_v45 }
 0x863   :  { %v2243_v50 = vpop.eup %2242 }
 0x864   :  { %v718_v51 = vmul.f32 %v2243_v50, %v712_v49  ;;  %v2588_v10 = vadd.f32 %v728_v53, %v723_v52 }
 0x866   :  { %v724_v9 = vmul.f32 %v722_v46, %v718_v51 }
 0x868   :  { %v2590_v54 = vadd.f32 %v728_v53, %v724_v9 }
 0x86a   :  { %v784_v55 = vpack.c.bf16 %v2590_v54, %v2588_v10 }
 0x86c   :  { %2030 = vmatmul.mubr.bf16.vlgmr.msra.gmra.mxu1 %v784_v55 }
 0x86d   :  { %2057 = vmatprep.mubr.msk.bf16.mxu1 %vm2287_vm0, %v2286_v0 }
 0x92c   :  { %v871_v58 = vpop.f32.mrf.mxu1 }
 0x92d   :  { %v872_v61 = vadd.f32 %v871_v58, %v788_v15 }
 0x92e   :  { %v2031_v59 = vpop.f32.mrf.mxu1 }
 0x930   :  { %v874_v60 = vpop.f32.mrf.mxu1 }
 0x931   :  { %v875_v62 = vadd.f32 %v874_v60, %v788_v15 }
 0x932   :  { %v2032_v63 = vpop.f32.mrf.mxu1 }
 0x933   :  { %v878_v1 = vpack.c.bf16 %v875_v62, %v872_v61 }
 0x935   :  { %880 = vrot.lane.b32.xlu0 %v878_v1, %s2289_s11  ;;  %2037 = vmatprep.mubr.msk.bf16.mxu0 %vm179_vm1, %v878_v1 }
 0x9a7   :  { %v881_v2 = vpop.permute.xlu0 %880 }
 0x9a8   :  { %884 = vrot.lane.b32.xlu1 %v881_v2, %s2288_s10 }
 0x9ac   :  { %882 = vrot.lane.b32.xlu1 %v878_v1, %s2288_s10 }
 0xa1a   :  { %v885_v3 = vpop.permute.xlu1 %884 }
 0xa1b   :  { %v896_v4 = vsel %vm179_vm1, %v885_v3, 0  ;;  %2143 = vmatprep.subr.msk.bf16.mxu0 %vm179_vm1, %v885_v3 }
 0xa1c   :  { %2034 = vmatpush3.bf16.xpose.msra.mxu0 %v896_v4 }
 0xa1e   :  { %v883_v5 = vpop.permute.xlu1 %882 }
 0xa1f   :  { %2144 = vmatprep.subr.msk.bf16.mxu0 %vm179_vm1, %v883_v5  ;;  %v893_v6 = vsel %vm179_vm1, %v883_v5, 0  ;;  %v2186_v5 = vld [vmem:[%s2824_s2 + $0x118] sm:$0xff]  }
 0xa24   :  { %2036 = vmatpush3.bf16.xpose.msra.mxu0 %v893_v6  ;;  %v2187_v6 = vld [vmem:[%s2824_s2 + $0x110] sm:$0xff]  }
 0xa25   :  { %2056 = vmatpush3.bf16.msra.mxu1 %v2187_v6 }
 0xa26   :  { %2081 = vmatprep.subr.bf16.mxu1 %v2286_v0 }
 0xa2b   :  { %2038 = vmatmul.mubr.msk.bf16.vlgmr.msra.gmra.mxu0 %vm179_vm1, %v881_v2 }
 0xaeb   :  { %v2039_v7 = vpop.f32.mrf.mxu0 }
 0xaec   :  { %v941_v17 = vadd.f32 %v2039_v7, %v2413_v38 }
 0xaed   :  { %v932_v8 = vpop.f32.mrf.mxu0 }
 0xaee   :  { %v933_v11 = vadd.f32 %v932_v8, %v2395_v30  ;;  %v953_v23 = vsel %vm241_vm2, %v941_v17, -inf }
 0xaef   :  { %v2040_v16 = vpop.f32.mrf.mxu0 }
 0xaf0   :  { %v947_v18 = vsel %vm241_vm2, %v933_v11, -inf  ;;  %v944_v21 = vadd.f32 %v2040_v16, %v2400_v32 }
 0xaf1   :  { %v935_v19 = vpop.f32.mrf.mxu0  ;;  %948 = vmax.xlane.f32.xlu0 %v947_v18 }
 0xaf2   :  { %v936_v20 = vadd.f32 %v935_v19, %v2406_v35  ;;  %v956_v25 = vsel %vm241_vm2, %v944_v21, -inf }
 0xaf4   :  { %v950_v22 = vsel %vm241_vm2, %v936_v20, -inf }
 0xaf5   :  { %951 = vmax.xlane.f32.xlu1 %v950_v22  ;;  %954 = vmax.xlane.f32.xlu0 %v953_v23 }
 0xaf9   :  { %957 = vmax.xlane.f32.xlu0 %v956_v25 }
 0xb7a   :  { %v949_v30 = vpop.xlane.xlu0 %948 }
 0xb7b   :  { %v959_v26 = vsub.f32 %v933_v11, %v949_v30 }
 0xb7d   :  { %v963_v36 = vmul.f32 1.442695, %v959_v26 }
 0xb7e   :  { %v952_v38 = vpop.xlane.xlu1 %951  ;;  %v955_v28 = vpop.xlane.xlu0 %954 }
 0xb7f   :  { %v961_v29 = vsub.f32 %v941_v17, %v955_v28  ;;  %v960_v31 = vsub.f32 %v936_v20, %v952_v38  ;;  %v1159_v20 = vrot.slane %v2599_v57, %v2447_v34 }
 0xb81   :  { %v967_v33 = vmul.f32 1.442695, %v961_v29  ;;  %v965_v32 = vmul.f32 1.442695, %v960_v31 }
 0xb82   :  { %v958_v35 = vpop.xlane.xlu0 %957 }
 0xb83   :  { %v962_v37 = vsub.f32 %v944_v21, %v958_v35  ;;  %2244 = vpow2.f32 %v967_v33 }
 0xb84   :  { %2246 = vpow2.f32 %v963_v36 }
 0xb85   :  { %v969_v39 = vmul.f32 1.442695, %v962_v37 }
 0xb87   :  { %2248 = vpow2.f32 %v969_v39  ;;  %v2189_v39 = vld [vmem:[%s2824_s2 + $0x150] sm:$0xff]  }
 0xb88   :  { %2250 = vpow2.f32 %v965_v32 }
 0xb90   :  { %v2245_v40 = vpop.eup %2244 }
 0xb91   :  { %v977_v41 = vsel %vm241_vm2, %v2245_v40, 0.0  ;;  %v2247_v43 = vpop.eup %2246 }
 0xb92   :  { %978 = vadd.xlane.f32.xlu1 %v977_v41  ;;  %v971_v49 = vsel %vm241_vm2, %v2247_v43, 0.0  ;;  %v2192_v41 = vld [vmem:[%s2824_s2 + $0x138] sm:$0xff]  }
 0xb94   :  { %v2249_v44 = vpop.eup %2248 }
 0xb95   :  { %v980_v45 = vsel %vm241_vm2, %v2249_v44, 0.0  ;;  %v2251_v46 = vpop.eup %2250 }
 0xb96   :  { %981 = vadd.xlane.f32.xlu0 %v980_v45  ;;  %972 = vadd.xlane.f32.xlu1 %v971_v49  ;;  %v974_v50 = vsel %vm241_vm2, %v2251_v46, 0.0  ;;  %v2195_v45 = vld [vmem:[%s2824_s2 + $0x120] sm:$0xff]   ;;  %v2197_v49 = vld [vmem:[%s2824_s2 + $0x190] sm:$0xff]  }
 0xb9a   :  { %975 = vadd.xlane.f32.xlu0 %v974_v50  ;;  %v2198_v50 = vld [vmem:[%s2824_s2 + $0x188] sm:$0xff]  }
 0xba7   :  { %995 = vrot.lane.b32.xlu1 %v881_v2, %s2290_s1 }
 0xbb0   :  { %993 = vrot.lane.b32.xlu0 %v878_v1, %s2290_s1 }
 0xc1b   :  { %v979_v51 = vpop.xlane.xlu1 %978 }
 0xc1f   :  { %v982_v52 = vpop.xlane.xlu0 %981  ;;  %v973_v53 = vpop.xlane.xlu1 %972 }
 0xc20   :  { %2252 = vrcp.f32 %v982_v52  ;;  %v2200_v52 = vld [vmem:[%s2824_s2 + $0x178] sm:$0xff]  }
 0xc21   :  { %2254 = vrcp.f32 %v973_v53 }
 0xc22   :  { %2256 = vrcp.f32 %v979_v51  ;;  %v2199_v51 = vld [vmem:[%s2824_s2 + $0x180] sm:$0xff]  }
 0xc23   :  { %v976_v9 = vpop.xlane.xlu0 %975  ;;  %v996_v55 = vpop.permute.xlu1 %995 }
 0xc24   :  { %2258 = vrcp.f32 %v976_v9  ;;  %2041 = vmatprep.subr.bf16.mxu0 %v996_v55 }
 0xc25   :  { %2042 = vmatpush3.bf16.msra.mxu0 %v996_v55 }
 0xc27   :  { %v994_v58 = vpop.permute.xlu0 %993 }
 0xc28   :  { %2043 = vmatprep.subr.bf16.mxu0 %v994_v58 }
 0xc29   :  { %2044 = vmatpush3.bf16.msra.mxu0 %v994_v58 }
 0xc2a   :  { %2049 = vmatprep.subr.bf16.mxu0 %v2286_v0 }
 0xc2d   :  { %v2253_v15 = vpop.eup %2252 }
 0xc2e   :  { %v2255_v59 = vpop.eup %2254  ;;  %v990_v62 = vmul.f32 %v2253_v15, %v2249_v44  ;;  %v2194_v44 = vld [vmem:[%s2824_s2 + $0x128] sm:$0xff]  }
 0xc2f   :  { %v2257_v60 = vpop.eup %2256  ;;  %v987_v63 = vmul.f32 %v2255_v59, %v2247_v43  ;;  %v2193_v43 = vld [vmem:[%s2824_s2 + $0x130] sm:$0xff]  }
 0xc30   :  { %v989_v2 = vmul.f32 %v2257_v60, %v2245_v40  ;;  %v2191_v40 = vld [vmem:[%s2824_s2 + $0x140] sm:$0xff]  }
 0xc31   :  { %v2259_v61 = vpop.eup %2258 }
 0xc32   :  { %v988_v1 = vmul.f32 %v2259_v61, %v2251_v46  ;;  %v992_v4 = vpack.c.bf16 %v990_v62, %v989_v2  ;;  %v2196_v46 = vld [vmem:[%s2824_s2 + $0x198] sm:$0xff]  }
 0xc34   :  { %v991_v3 = vpack.c.bf16 %v988_v1, %v987_v63 }
 0xc36   :  { %2045 = vmatprep.mubr.msk.bf16.mxu0 %vm241_vm2, %v991_v3 }
 0xc37   :  { %2046 = vmatmul.mubr.msk.bf16.vlgmr.msra.gmra.mxu0 %vm241_vm2, %v992_v4 }
 0xc38   :  { %2051 = vmatprep.mubr.msk.bf16.mxu0 %vm2287_vm0, %v2286_v0  ;;  %2050 = vmatpush3.bf16.msra.mxu0 %v2186_v5 }
 0xc39   :  { %2061 = vmatprep.subr.bf16.mxu0 %v2286_v0 }
 0xcf7   :  { %v2047_v7 = vpop.f32.mrf.mxu0 }
 0xcf9   :  { %v1039_v8 = vpop.f32.mrf.mxu0 }
 0xcfb   :  { %v2048_v11 = vpop.f32.mrf.mxu0 }
 0xcfc   :  { %v1055_v16 = vpack.c.bf16 %v2048_v11, %v2047_v7 }
 0xcfd   :  { %v1042_v17 = vpop.f32.mrf.mxu0 }
 0xcfe   :  { %v1054_v18 = vpack.c.bf16 %v1042_v17, %v1039_v8  ;;  %2052 = vmatmul.mubr.msk.bf16.vlgmr.msra.gmra.mxu0 %vm179_vm1, %v1055_v16  ;;  %v1195_v16 = vrot.slane %v2599_v57, %v2516_v24 }
 0xcff   :  { %2077 = vmatprep.mubr.msk.bf16.mxu0 %vm2287_vm0, %v2286_v0 }
 0xd00   :  { %2058 = vmatmul.mubr.msk.bf16.vlgmr.msra.gmra.mxu1 %vm179_vm1, %v1054_v18 }
 0xd01   :  { %2097 = vmatprep.mubr.msk.bf16.mxu1 %vm2287_vm0, %v2286_v0  ;;  %2082 = vmatpush3.bf16.msra.mxu1 %v2196_v46 }
 0xd02   :  { %2083 = vmatprep.subr.bf16.mxu1 %v2286_v0 }
 0xd05   :  { %2084 = vmatpush3.bf16.msra.mxu1 %v2197_v49 }
 0xd06   :  { %2085 = vmatprep.subr.bf16.mxu1 %v2286_v0 }
 0xd09   :  { %2086 = vmatpush3.bf16.msra.mxu1 %v2198_v50 }
 0xd0a   :  { %2087 = vmatprep.subr.bf16.mxu1 %v2286_v0 }
 0xd0d   :  { %2088 = vmatpush3.bf16.msra.mxu1 %v2199_v51 }
 0xd0e   :  { %2089 = vmatprep.subr.bf16.mxu1 %v2286_v0 }
 0xd11   :  { %2090 = vmatpush3.bf16.msra.mxu1 %v2200_v52 }
 0xd12   :  { %2091 = vmatprep.subr.bf16.mxu1 %v2286_v0 }
 0xdbe   :  { %v1099_v19 = vpop.f32.mrf.mxu0 }
 0xdc0   :  { %v2053_v21 = vpop.f32.mrf.mxu0  ;;  %v1149_v22 = vpop.f32.mrf.mxu1 }
 0xdc1   :  { %v1150_v23 = vadd.f32 %v1149_v22, %v1099_v19  ;;  %v1201_v21 = vrot.slane %v2599_v57, %v2522_v27 }
 0xdc2   :  { %v1102_v25 = vpop.f32.mrf.mxu0  ;;  %v2059_v30 = vpop.f32.mrf.mxu1 }
 0xdc3   :  { %v1160_v26 = vadd.f32 %v1159_v20, %v1150_v23 }
 0xdc4   :  { %v2054_v38 = vpop.f32.mrf.mxu0  ;;  %v1152_v28 = vpop.f32.mrf.mxu1 }
 0xdc5   :  { %v1153_v29 = vadd.f32 %v1152_v28, %v1102_v25  ;;  %v2648_v31 = vadd.f32 %v1160_v26, %v2588_v10  ;;  %v2188_v10 = vld [vmem:[%s2824_s2 + $0x158] sm:$0xff]   ;;  %v2201_v26 = vld [vmem:[%s2824_s2 + $0x170] sm:$0xff]   ;;  %v2202_v38 = vld [vmem:[%s2824_s2 + $0x168] sm:$0xff]  }
 0xdc6   :  { %v2060_v33 = vpop.f32.mrf.mxu1  ;;  %2062 = vmatpush3.bf16.msra.mxu0 %v2188_v10  ;;  %2092 = vmatpush3.bf16.msra.mxu1 %v2201_v26  ;;  %v2203_v28 = vld [vmem:[%s2824_s2 + $0x160] sm:$0xff]  }
 0xdc7   :  { %v1161_v36 = vadd.f32 %v1159_v20, %v1153_v29  ;;  %1164 = vadd.xlane.f32.xlu1 %v2648_v31  ;;  %v1168_v35 = vmul.f32 %v2648_v31, %v2648_v31  ;;  %2063 = vmatprep.subr.bf16.mxu0 %v2286_v0  ;;  %v1208_v29 = vrot.slane %v2599_v57, %v502_v47 }
 0xdc8   :  { %2093 = vmatprep.subr.bf16.mxu1 %v2286_v0 }
 0xdc9   :  { %v2654_v37 = vadd.f32 %v1161_v36, %v2590_v54  ;;  %v2190_v54 = vld [vmem:[%s2824_s2 + $0x148] sm:$0xff]  }
 0xdca   :  { %2064 = vmatpush3.bf16.msra.mxu0 %v2189_v39  ;;  %2094 = vmatpush3.bf16.msra.mxu1 %v2202_v38 }
 0xdcb   :  { %1170 = vadd.xlane.f32.xlu1 %v1168_v35  ;;  %1166 = vadd.xlane.f32.xlu0 %v2654_v37  ;;  %v1169_v32 = vmul.f32 %v2654_v37, %v2654_v37 }
 0xdcc   :  { %2065 = vmatprep.subr.bf16.mxu0 %v2286_v0  ;;  %2095 = vmatprep.subr.bf16.mxu1 %v2286_v0 }
 0xdce   :  { %2066 = vmatpush3.bf16.msra.mxu0 %v2190_v54  ;;  %2096 = vmatpush3.bf16.msra.mxu1 %v2203_v28 }
 0xdcf   :  { %1172 = vadd.xlane.f32.xlu0 %v1169_v32  ;;  %2067 = vmatprep.subr.bf16.mxu0 %v2286_v0 }
 0xdd0   :  { %2121 = vmatprep.subr.bf16.mxu1 %v2286_v0 }
 0xdd2   :  { %2068 = vmatpush3.bf16.msra.mxu0 %v2191_v40  ;;  %v1304_v40 = vrot.slane %v2599_v57, %v598_v56  ;;  %v2205_v56 = vld [vmem:[%s2824_s2 + $0x1d0] sm:$0xff]  }
 0xdd3   :  { %2069 = vmatprep.subr.bf16.mxu0 %v2286_v0 }
 0xdd6   :  { %2070 = vmatpush3.bf16.msra.mxu0 %v2192_v41 }
 0xdd7   :  { %2071 = vmatprep.subr.bf16.mxu0 %v2286_v0 }
 0xdda   :  { %2072 = vmatpush3.bf16.msra.mxu0 %v2193_v43 }
 0xddb   :  { %2073 = vmatprep.subr.bf16.mxu0 %v2286_v0 }
 0xdde   :  { %2074 = vmatpush3.bf16.msra.mxu0 %v2194_v44 }
 0xddf   :  { %2075 = vmatprep.subr.bf16.mxu0 %v2286_v0 }
 0xde2   :  { %2076 = vmatpush3.bf16.msra.mxu0 %v2195_v45 }
 0xde3   :  { %2101 = vmatprep.subr.bf16.mxu0 %v2286_v0 }
 0xe50   :  { %v1165_v53 = vpop.xlane.xlu1 %1164 }
 0xe51   :  { %v1174_v9 = vmul.f32 0.03125, %v1165_v53  ;;  %v2204_v53 = vld [vmem:[%s2824_s2 + $0x1d8] sm:$0xff]  }
 0xe53   :  { %v1178_v15 = vmul.f32 %v1174_v9, %v1174_v9  ;;  %v1184_v7 = vsub.f32 %v2648_v31, %v1174_v9  ;;  %v2206_v9 = vld [vmem:[%s2824_s2 + $0x1c8] sm:$0xff]  }
 0xe54   :  { %v1171_v55 = vpop.xlane.xlu1 %1170  ;;  %v1167_v58 = vpop.xlane.xlu0 %1166 }
 0xe55   :  { %v1176_v59 = vmul.f32 0.03125, %v1171_v55  ;;  %v1175_v60 = vmul.f32 0.03125, %v1167_v58  ;;  %v2207_v55 = vld [vmem:[%s2824_s2 + $0x1c0] sm:$0xff]   ;;  %v2208_v58 = vld [vmem:[%s2824_s2 + $0x1b8] sm:$0xff]  }
 0xe57   :  { %v1180_v61 = vsub.f32 %v1176_v59, %v1178_v15  ;;  %v1179_v1 = vmul.f32 %v1175_v60, %v1175_v60  ;;  %v1185_v17 = vsub.f32 %v2654_v37, %v1175_v60  ;;  %v2209_v15 = vld [vmem:[%s2824_s2 + $0x1b0] sm:$0xff]   ;;  %v2210_v59 = vld [vmem:[%s2824_s2 + $0x1a8] sm:$0xff]   ;;  %v2211_v60 = vld [vmem:[%s2824_s2 + $0x1a0] sm:$0xff]  }
 0xe58   :  { %v1173_v62 = vpop.xlane.xlu0 %1172 }
 0xe59   :  { %v1182_v63 = vmax.f32 %v1180_v61, 0.0  ;;  %v1177_v2 = vmul.f32 0.03125, %v1173_v62 }
 0xe5b   :  { %v1186_v3 = vadd.f32 1e-12, %v1182_v63  ;;  %v1181_v4 = vsub.f32 %v1177_v2, %v1179_v1 }
 0xe5d   :  { %2260 = vrsqrt.f32 %v1186_v3  ;;  %v1183_v5 = vmax.f32 %v1181_v4, 0.0 }
 0xe5f   :  { %v1187_v6 = vadd.f32 1e-12, %v1183_v5 }
 0xe61   :  { %2262 = vrsqrt.f32 %v1187_v6 }
 0xe6a   :  { %v2261_v8 = vpop.eup %2260 }
 0xe6b   :  { %v1190_v11 = vmul.f32 %v2261_v8, %v1184_v7 }
 0xe6d   :  { %v1196_v20 = vmul.f32 %v1195_v16, %v1190_v11 }
 0xe6e   :  { %v2263_v18 = vpop.eup %2262 }
 0xe6f   :  { %v1191_v19 = vmul.f32 %v2263_v18, %v1185_v17  ;;  %v1202_v23 = vadd.f32 %v1201_v21, %v1196_v20  ;;  %v1427_v20 = vrot.slane %v2599_v57, %v721_v42 }
 0xe71   :  { %v1197_v22 = vmul.f32 %v1195_v16, %v1191_v19 }
 0xe73   :  { %v1203_v25 = vadd.f32 %v1201_v21, %v1197_v22 }
 0xe75   :  { %v1204_v30 = vpack.c.bf16 %v1203_v25, %v1202_v23 }
 0xe77   :  { %2078 = vmatmul.mubr.bf16.vlgmr.msra.gmra.mxu0 %v1204_v30 }
 0xe78   :  { %2117 = vmatprep.mubr.msk.bf16.mxu0 %vm2287_vm0, %v2286_v0  ;;  %2102 = vmatpush3.bf16.msra.mxu0 %v2204_v53 }
 0xe79   :  { %2103 = vmatprep.subr.bf16.mxu0 %v2286_v0 }
 0xe7c   :  { %2104 = vmatpush3.bf16.msra.mxu0 %v2205_v56 }
 0xe7d   :  { %2105 = vmatprep.subr.bf16.mxu0 %v2286_v0 }
 0xe80   :  { %2106 = vmatpush3.bf16.msra.mxu0 %v2206_v9 }
 0xe81   :  { %2107 = vmatprep.subr.bf16.mxu0 %v2286_v0 }
 0xe84   :  { %2108 = vmatpush3.bf16.msra.mxu0 %v2207_v55 }
 0xe85   :  { %2109 = vmatprep.subr.bf16.mxu0 %v2286_v0 }
 0xe88   :  { %2110 = vmatpush3.bf16.msra.mxu0 %v2208_v58 }
 0xe89   :  { %2111 = vmatprep.subr.bf16.mxu0 %v2286_v0 }
 0xe8c   :  { %2112 = vmatpush3.bf16.msra.mxu0 %v2209_v15 }
 0xe8d   :  { %2113 = vmatprep.subr.bf16.mxu0 %v2286_v0 }
 0xe90   :  { %2114 = vmatpush3.bf16.msra.mxu0 %v2210_v59 }
 0xe91   :  { %2115 = vmatprep.subr.bf16.mxu0 %v2286_v0 }
 0xe94   :  { %2116 = vmatpush3.bf16.msra.mxu0 %v2211_v60 }
 0xf37   :  { %v1291_v31 = vpop.f32.mrf.mxu0 }
 0xf38   :  { %v1292_v36 = vadd.f32 %v1291_v31, %v1208_v29 }
 0xf39   :  { %v2079_v33 = vpop.f32.mrf.mxu0 }
 0xf3a   :  { %v1298_v10 = vmax.f32 %v1292_v36, 0.0 }
 0xf3b   :  { %v1294_v35 = vpop.f32.mrf.mxu0 }
 0xf3c   :  { %v1295_v37 = vadd.f32 %v1294_v35, %v1208_v29 }
 0xf3d   :  { %v2080_v32 = vpop.f32.mrf.mxu0 }
 0xf3e   :  { %v1299_v39 = vmax.f32 %v1295_v37, 0.0 }
 0xf40   :  { %v1300_v54 = vpack.c.bf16 %v1299_v39, %v1298_v10 }
 0xf42   :  { %2098 = vmatmul.mubr.bf16.vlgmr.msra.gmra.mxu1 %v1300_v54 }
 0xf43   :  { %2137 = vmatprep.mubr.msk.bf16.mxu1 %vm2287_vm0, %v2286_v0 }
0x1002   :  { %v1387_v41 = vpop.f32.mrf.mxu1 }
0x1003   :  { %v1388_v43 = vadd.f32 %v1387_v41, %v1304_v40 }
0x1004   :  { %v2099_v47 = vpop.f32.mrf.mxu1 }
0x1005   :  { %v1394_v44 = vadd.f32 %v1388_v43, %v1202_v23  ;;  %v1433_v23 = vrot.slane %v2599_v57, %v727_v48 }
0x1006   :  { %v1390_v45 = vpop.f32.mrf.mxu1 }
0x1007   :  { %v1391_v46 = vadd.f32 %v1390_v45, %v1304_v40  ;;  %1396 = vadd.xlane.f32.xlu1 %v1394_v44  ;;  %v1400_v51 = vmul.f32 %v1394_v44, %v1394_v44 }
0x1008   :  { %v2100_v49 = vpop.f32.mrf.mxu1 }
0x1009   :  { %v1395_v50 = vadd.f32 %v1391_v46, %v1203_v25 }
0x100b   :  { %1402 = vadd.xlane.f32.xlu1 %v1400_v51  ;;  %1398 = vadd.xlane.f32.xlu0 %v1395_v50  ;;  %v1401_v52 = vmul.f32 %v1395_v50, %v1395_v50 }
0x100f   :  { %1404 = vadd.xlane.f32.xlu0 %v1401_v52  ;;  %v2779_v52 = vld [vmem:[%s2826_s3 + $0x10] sm:$0xff] }
0x1010   :  { %v1497_v53 = vrot.slane %v2779_v52, %v2369_v14  ;;  %v1503_v58 = vrot.slane %v2779_v52, %v2447_v34  ;;  %v2213_v14 = vld [vmem:[%s2824_s2 + $0x210] sm:$0xff]   ;;  %v2214_v34 = vld [vmem:[%s2824_s2 + $0x208] sm:$0xff]  }
0x1090   :  { %v1397_v61 = vpop.xlane.xlu1 %1396 }
0x1091   :  { %v1406_v62 = vmul.f32 0.03125, %v1397_v61 }
0x1093   :  { %v1410_v2 = vmul.f32 %v1406_v62, %v1406_v62  ;;  %v1416_v21 = vsub.f32 %v1394_v44, %v1406_v62 }
0x1094   :  { %v1403_v63 = vpop.xlane.xlu1 %1402  ;;  %v1399_v1 = vpop.xlane.xlu0 %1398 }
0x1095   :  { %v1408_v3 = vmul.f32 0.03125, %v1403_v63  ;;  %v1407_v4 = vmul.f32 0.03125, %v1399_v1  ;;  %v2212_v63 = vld [vmem:[%s2824_s2 + $0x218] sm:$0xff]   ;;  %v2215_v1 = vld [vmem:[%s2824_s2 + $0x200] sm:$0xff]  }
0x1096   :  { %2122 = vmatpush3.bf16.msra.mxu1 %v2212_v63 }
0x1097   :  { %v1412_v5 = vsub.f32 %v1408_v3, %v1410_v2  ;;  %v1411_v8 = vmul.f32 %v1407_v4, %v1407_v4  ;;  %v1417_v30 = vsub.f32 %v1395_v50, %v1407_v4  ;;  %2123 = vmatprep.subr.bf16.mxu1 %v2286_v0  ;;  %v2216_v2 = vld [vmem:[%s2824_s2 + $0x1f8] sm:$0xff]   ;;  %v2217_v3 = vld [vmem:[%s2824_s2 + $0x1f0] sm:$0xff]   ;;  %v2218_v4 = vld [vmem:[%s2824_s2 + $0x1e8] sm:$0xff]  }
0x1098   :  { %v1405_v6 = vpop.xlane.xlu0 %1404 }
0x1099   :  { %v1414_v7 = vmax.f32 %v1412_v5, 0.0  ;;  %v1409_v11 = vmul.f32 0.03125, %v1405_v6  ;;  %v2219_v5 = vld [vmem:[%s2824_s2 + $0x1e0] sm:$0xff]   ;;  %v1510_v6 = vrot.slane %v2779_v52, %v2516_v24 }
0x109a   :  { %2124 = vmatpush3.bf16.msra.mxu1 %v2213_v14 }
0x109b   :  { %v1418_v16 = vadd.f32 1e-12, %v1414_v7  ;;  %v1413_v17 = vsub.f32 %v1409_v11, %v1411_v8  ;;  %2125 = vmatprep.subr.bf16.mxu1 %v2286_v0 }
0x109d   :  { %2264 = vrsqrt.f32 %v1418_v16  ;;  %v1415_v18 = vmax.f32 %v1413_v17, 0.0 }
0x109e   :  { %2126 = vmatpush3.bf16.msra.mxu1 %v2214_v34 }
0x109f   :  { %v1419_v19 = vadd.f32 1e-12, %v1415_v18  ;;  %2127 = vmatprep.subr.bf16.mxu1 %v2286_v0 }
0x10a1   :  { %2266 = vrsqrt.f32 %v1419_v19 }
0x10a2   :  { %2128 = vmatpush3.bf16.msra.mxu1 %v2215_v1 }
0x10a3   :  { %2129 = vmatprep.subr.bf16.mxu1 %v2286_v0 }
0x10a6   :  { %2130 = vmatpush3.bf16.msra.mxu1 %v2216_v2 }
0x10a7   :  { %2131 = vmatprep.subr.bf16.mxu1 %v2286_v0 }
0x10aa   :  { %v2265_v22 = vpop.eup %2264  ;;  %2132 = vmatpush3.bf16.msra.mxu1 %v2217_v3 }
0x10ab   :  { %v1422_v25 = vmul.f32 %v2265_v22, %v1416_v21  ;;  %2133 = vmatprep.subr.bf16.mxu1 %v2286_v0 }
0x10ad   :  { %v1428_v26 = vmul.f32 %v1427_v20, %v1422_v25 }
0x10ae   :  { %v2267_v38 = vpop.eup %2266  ;;  %2134 = vmatpush3.bf16.msra.mxu1 %v2218_v4 }
0x10af   :  { %v1423_v28 = vmul.f32 %v2267_v38, %v1417_v30  ;;  %v1434_v29 = vadd.f32 %v1433_v23, %v1428_v26  ;;  %2135 = vmatprep.subr.bf16.mxu1 %v2286_v0 }
0x10b1   :  { %v1429_v31 = vmul.f32 %v1427_v20, %v1423_v28 }
0x10b2   :  { %2136 = vmatpush3.bf16.msra.mxu1 %v2219_v5 }
0x10b3   :  { %v1435_v33 = vadd.f32 %v1433_v23, %v1429_v31 }
0x10b5   :  { %v1469_v36 = vadd.f32 %v1435_v33, %v1434_v29 }
0x10b7   :  { %v1470_v35 = vrot.slane %v1469_v36, 4 }
0x10b9   :  { %v1471_v37 = vadd.f32 %v1470_v35, %v1469_v36 }
0x10bb   :  { %v1472_v32 = vrot.slane %v1471_v37, 2 }
0x10bd   :  { %v1473_v10 = vadd.f32 %v1472_v32, %v1471_v37 }
0x10bf   :  { %v1474_v42 = vrot.slane %v1473_v10, 1 }
0x10c1   :  { %v1475_v39 = vadd.f32 %v1474_v42, %v1473_v10  ;;  %v1615_v10 = vand.u32 127, %v78_v12  ;;  %v1645_v12 = vrot.slane %v2779_v52, %v2522_v27 }
0x10c3   :  { %v1477_v54 = vmul.f32 0.0625, %v1475_v39  ;;  %vm1628_vm3 = vcmp.lt.s32.totalorder %v1615_v10, 16 }
0x10c5   :  { %v1478_v40 = vsub.f32 %v1434_v29, %v1477_v54  ;;  %v1479_v13 = vsub.f32 %v1435_v33, %v1477_v54 }
0x10c7   :  { %v1480_v41 = vmul.f32 %v1478_v40, %v1478_v40  ;;  %v1481_v48 = vmul.f32 %v1479_v13, %v1479_v13 }
0x10c9   :  { %v1482_v57 = vadd.f32 %v1481_v48, %v1480_v41 }
0x10cb   :  { %v1483_v43 = vrot.slane %v1482_v57, 4 }
0x10cd   :  { %v1484_v47 = vadd.f32 %v1483_v43, %v1482_v57 }
0x10cf   :  { %v1485_v44 = vrot.slane %v1484_v47, 2 }
0x10d1   :  { %v1486_v45 = vadd.f32 %v1485_v44, %v1484_v47 }
0x10d3   :  { %v1487_v46 = vrot.slane %v1486_v45, 1 }
0x10d5   :  { %v1488_v49 = vadd.f32 %v1487_v46, %v1486_v45 }
0x10d7   :  { %v1489_v50 = vmul.f32 0.0625, %v1488_v49 }
0x10d9   :  { %v1490_v51 = vadd.f32 1e-05, %v1489_v50 }
0x10db   :  { %2268 = vrsqrt.f32 %v1490_v51 }
0x10e8   :  { %v2269_v56 = vpop.eup %2268 }
0x10e9   :  { %v1492_v9 = vmul.f32 %v2269_v56, %v1478_v40  ;;  %v1493_v55 = vmul.f32 %v2269_v56, %v1479_v13 }
0x10eb   :  { %v1498_v15 = vmul.f32 %v1497_v53, %v1492_v9  ;;  %v1499_v59 = vmul.f32 %v1497_v53, %v1493_v55 }
0x10ed   :  { %v1504_v60 = vadd.f32 %v1503_v58, %v1498_v15  ;;  %v1505_v61 = vadd.f32 %v1503_v58, %v1499_v59 }
0x10ef   :  { %v1506_v62 = vpack.c.bf16 %v1505_v61, %v1504_v60 }
0x10f1   :  { %2118 = vmatmul.mubr.bf16.vlgmr.msra.gmra.mxu0 %v1506_v62 }
0x11b1   :  { %v1593_v7 = vpop.f32.mrf.mxu0 }
0x11b2   :  { %v1594_v8 = vadd.f32 %v1593_v7, %v1510_v6 }
0x11b3   :  { %v2119_v11 = vpop.f32.mrf.mxu0 }
0x11b4   :  { %v1819_v16 = vmul.f32 -1.442695, %v1594_v8 }
0x11b5   :  { %v1596_v17 = vpop.f32.mrf.mxu0 }
0x11b6   :  { %2270 = vpow2.f32 %v1819_v16  ;;  %v1597_v18 = vadd.f32 %v1596_v17, %v1510_v6 }
0x11b7   :  { %v2120_v19 = vpop.f32.mrf.mxu0 }
0x11b8   :  { %v1820_v20 = vmul.f32 -1.442695, %v1597_v18 }
0x11ba   :  { %2272 = vpow2.f32 %v1820_v20 }
0x11c3   :  { %v2271_v21 = vpop.eup %2270 }
0x11c4   :  { %v1606_v22 = vadd.f32 1.0, %v2271_v21 }
0x11c6   :  { %2274 = vrcp.f32 %v1606_v22 }
0x11c7   :  { %v2273_v23 = vpop.eup %2272 }
0x11c8   :  { %v1607_v25 = vadd.f32 1.0, %v2273_v23 }
0x11ca   :  { %2276 = vrcp.f32 %v1607_v25 }
0x11d3   :  { %v2275_v0 = vpop.eup %2274 }
0x11d7   :  { %v2277_v30 = vpop.eup %2276 }
0x11d8   :  { %v1641_v26 = vpack.c.bf16 %v2277_v30, %v2275_v0  ;;  %v1612_v24 = vadd.f32 %v2277_v30, %v2275_v0 }
0x11da   :  { %2138 = vmatmul.mubr.bf16.vlgmr.msra.gmra.mxu1 %v1641_v26  ;;  %v1613_v38 = vmul.f32 0.5, %v1612_v24 }
0x11dc   :  { %2278 = vrcp.f32 %v1613_v38  ;;  %v1621_v28 = vsub.f32 1.0, %v1613_v38 }
0x11de   :  { %2280 = vrcp.f32 %v1621_v28 }
0x11e9   :  { %v2279_v29 = vpop.eup %2278 }
0x11ea   :  { %v1617_v31 = vmul.f32 0.05, %v2279_v29 }
0x11eb   :  { %v2281_v33 = vpop.eup %2280 }
0x11ec   :  { %2282 = vlog2.f32 %v1617_v31  ;;  %v1623_v36 = vmul.f32 0.95, %v2281_v33 }
0x11ee   :  { %2284 = vlog2.f32 %v1623_v36 }
0x11f9   :  { %v2283_v35 = vpop.eup %2282 }
0x11fa   :  { %v1619_v37 = vmul.f32 0.6931472, %v2283_v35 }
0x11fb   :  { %v2285_v32 = vpop.eup %2284 }
0x11fc   :  { %v1625_v42 = vmul.f32 0.6931472, %v2285_v32  ;;  %v1620_v39 = vmul.f32 0.05, %v1619_v37 }
0x11fe   :  { %v1626_v54 = vmul.f32 0.95, %v1625_v42 }
0x1200   :  { %v1627_v40 = vadd.f32 %v1626_v54, %v1620_v39 }
0x1202   :  { %v1629_v13 = vsel %vm1628_vm3, %v1627_v40, 0.0 }
0x1203   :  { %1630 = vadd.xlane.f32.xlu1 %v1629_v13 }
0x128c   :  { %v1631_v41 = vpop.xlane.xlu1 %1630 }
0x128d   :  { %v1632_v48 = vrot.slane %v1631_v41, 4 }
0x128f   :  { %v1633_v57 = vadd.f32 %v1632_v48, %v1631_v41 }
0x1291   :  { %v1634_v43 = vrot.slane %v1633_v57, 2 }
0x1293   :  { %v1635_v47 = vadd.f32 %v1634_v43, %v1633_v57 }
0x1295   :  { %v1636_v44 = vrot.slane %v1635_v47, 1 }
0x1297   :  { %v1637_v45 = vadd.f32 %v1636_v44, %v1635_v47 }
0x1299   :  { %2145 = vpush %v1637_v45 }
0x129a   :  { %v1728_v46 = vpop.f32.mrf.mxu1 }
0x129b   :  { %v1729_v9 = vadd.f32 %v1728_v46, %v1645_v12 }
0x129c   :  { %v2139_v49 = vpop.f32.mrf.mxu1 }
0x129e   :  { %v1731_v50 = vpop.f32.mrf.mxu1 }
0x129f   :  { %v1732_v53 = vadd.f32 %v1731_v50, %v1645_v12 }
0x12a0   :  { %v2140_v51 = vpop.f32.mrf.mxu1 }
0x12a1   :  { %v1736_v56 = vrot.slane %v1732_v53, 7 }
0x12a3   :  { %v1739_v15 = vsel %vm1738_vm4, %v1729_v9, %v1736_v56 }
0x12ca   :  { %s2146_s2 = spop %2145 }
0x12cb   :  { %v1639_v55 = vstv %s2146_s2 }
0x12cc   :  { %v1640_v58 = vmul.f32 3.0, %v1639_v55 }
0x12ce   :  { %v1741_v59 = vsel %vm1740_vm5, %v1739_v15, %v1640_v58 }
0x12cf   :  { %1742 = vst [vmem:[%s2828_s4] sm:$0xff] %v1741_v59 }

</bundles_post_ra>
